<compile_context>
chip_gen: v7x
topology: tpu7x:2x2x1
jax: 0.10.0
libtpu: 0.0.40
codegen_flags: <defaults>
</compile_context>

<pallas_src>
import functools

import jax
import jax.numpy as jnp
from jax import lax
from jax.experimental import pallas as pl
from jax.experimental.pallas import tpu as pltpu


def _round_up(x, m):
    return (x + m - 1) // m * m


def _pick_row_tile(ho, wo, cp, budget_bytes=2 * 1024 * 1024):
    """Largest divisor of `ho` whose double-buffered f32 output tile fits the budget
    (capped at 8 rows so even small images get a multi-step, pipelined grid)."""
    max_rows = max(1, budget_bytes // (2 * wo * cp * 4))
    max_rows = min(max_rows, 8)
    best = 1
    for d in range(1, ho + 1):
        if ho % d == 0 and d <= max_rows:
            best = d
    return best


def _conv_kernel(x_ref, w_ref, b_ref, o_ref, *, ksize, stride, th, wo, cin, cp):
    # x_ref: (Hp, Wp, Cin)   bf16 reflection-padded image of one batch element (resident)
    # w_ref: (K, K, Cin, Cp) bf16 weights (Cout zero-padded to Cp, a multiple of 128)
    # b_ref: (1, Cp)         f32 bias
    # o_ref: (TH, Wo, Cp)    f32 output row tile
    ht = pl.program_id(1)
    row0 = pl.multiple_of(ht * (th * stride), th * stride)

    acc = jnp.zeros((th * wo, cp), jnp.float32)
    for dy in range(ksize):
        for dx in range(ksize):
            if stride == 1:
                win = x_ref[pl.ds(row0 + dy, th), pl.ds(dx, wo), :]
            else:  # general stride via strided dynamic slices
                win = x_ref[pl.ds(row0 + dy, th, stride), pl.ds(dx, wo, stride), :]
            # (TH, Wo, Cin) -> (TH*Wo, Cin): leading-dim merge, lane dim untouched.
            acc = acc + lax.dot_general(
                win.reshape(th * wo, cin), w_ref[dy, dx],
                dimension_numbers=(((1,), (0,)), ((), ())),
                preferred_element_type=jnp.float32)

    out = acc.reshape(th, wo, cp) + b_ref[...]
    o_ref[...] = out.astype(o_ref.dtype)


def conv_layer(x_nchw, weight_oihw, bias, *, stride):
    """Forward pass of ConvLayer: ReflectionPad2d(k//2) -> Conv2d(Cin, Cout, k, stride)."""
    cout, cin, k, _ = weight_oihw.shape
    pad = k // 2

    # NCHW -> NHWC, reflection pad (module semantics), bf16 activations for the MXU.
    x = jnp.transpose(x_nchw, (0, 2, 3, 1))
    xp = jnp.pad(x, ((0, 0), (pad, pad), (pad, pad), (0, 0)), mode="reflect")
    xp = xp.astype(jnp.bfloat16)

    # OIHW -> HWIO; pad Cout to a multiple of 128 for lane-dense MXU output / stores.
    cp = _round_up(cout, 128)
    w = jnp.transpose(weight_oihw, (2, 3, 1, 0))
    w = jnp.pad(w, ((0, 0), (0, 0), (0, 0), (0, cp - cout))).astype(jnp.bfloat16)
    b = jnp.pad(bias, (0, cp - cout)).astype(jnp.float32).reshape(1, cp)

    n, hp, wp, _ = xp.shape
    ho = (hp - k) // stride + 1
    wo = (wp - k) // stride + 1
    th = _pick_row_tile(ho, wo, cp)
    grid = (n, ho // th)

    kernel = functools.partial(_conv_kernel, ksize=k, stride=stride,
                               th=th, wo=wo, cin=cin, cp=cp)
    out = pl.pallas_call(
        kernel,
        out_shape=jax.ShapeDtypeStruct((n, ho, wo, cp), jnp.float32),
        grid=grid,
        in_specs=[
            # Padded image: block index depends only on the batch axis -> fetched once per
            # batch element, resident across all its row tiles; next image prefetched while
            # the last tiles of the current one compute.
            pl.BlockSpec((None, hp, wp, cin), lambda nb, hb: (nb, 0, 0, 0)),
            pl.BlockSpec((k, k, cin, cp), lambda nb, hb: (0, 0, 0, 0)),
            pl.BlockSpec((1, cp), lambda nb, hb: (0, 0)),
        ],
        out_specs=pl.BlockSpec((None, th, wo, cp), lambda nb, hb: (nb, hb, 0, 0)),
        compiler_params=pltpu.CompilerParams(
            dimension_semantics=("parallel", "parallel"),
            vmem_limit_bytes=32 * 1024 * 1024,  # explicit; sized for v7x's scoped VMEM
        ),
    )(xp, w, b)

    out = out[..., :cout]                      # drop channel padding
    return jnp.transpose(out, (0, 3, 1, 2))    # back to NCHW


def _ref_forward(x_nchw, weight_oihw, bias, stride):
    """Pure-XLA reference with the same bf16-input / f32-accumulate numerics."""
    k = weight_oihw.shape[-1]
    pad = k // 2
    x = jnp.transpose(x_nchw, (0, 2, 3, 1))
    xp = jnp.pad(x, ((0, 0), (pad, pad), (pad, pad), (0, 0)), mode="reflect")
    xp = xp.astype(jnp.bfloat16).astype(jnp.float32)
    w = jnp.transpose(weight_oihw, (2, 3, 1, 0)).astype(jnp.bfloat16).astype(jnp.float32)
    out = lax.conv_general_dilated(
        xp, w, (stride, stride), "VALID",
        dimension_numbers=("NHWC", "HWIO", "NHWC"))
    out = out + bias
    return jnp.transpose(out, (0, 3, 1, 2))


if __name__ == "__main__":
    key = jax.random.PRNGKey(0)
    n, cin, h, w = 2, 4, 16, 16
    cout = 8

    kx, kw, kb = jax.random.split(key, 3)
    x = jax.random.normal(kx, (n, cin, h, w), jnp.float32)

    # (kernel_size, stride) configs exercised here; stride > 1 is supported by the kernel
    # via strided pl.ds slices.
    for ksize, stride in [(3, 1), (5, 1)]:
        kw_i = jax.random.fold_in(kw, 10 * ksize + stride)
        kb_i = jax.random.fold_in(kb, 10 * ksize + stride)
        weight = 0.1 * jax.random.normal(kw_i, (cout, cin, ksize, ksize), jnp.float32)
        bias = 0.1 * jax.random.normal(kb_i, (cout,), jnp.float32)

        fwd = jax.jit(functools.partial(conv_layer, stride=stride))
        out = jax.block_until_ready(fwd(x, weight, bias))

        ho = (h + 2 * (ksize // 2) - ksize) // stride + 1
        assert out.shape == (n, cout, ho, ho), out.shape

        ref = _ref_forward(x, weight, bias, stride)
        err = float(jnp.max(jnp.abs(out - ref)))
        assert jnp.allclose(out, ref, atol=2e-3, rtol=2e-3), (ksize, stride, err)

    print("KERNEL_OK")
</pallas_src>

<mosaic_0001>
module attributes {stable_mosaic.version = 11 : i64} {
  func.func @_conv_kernel(%arg0: i32, %arg1: i32, %arg2: memref<1x18x18x4xbf16, #tpu.memory_space<vmem>>, %arg3: memref<3x3x4x128xbf16, #tpu.memory_space<vmem>>, %arg4: memref<1x128xf32, #tpu.memory_space<vmem>>, %arg5: memref<1x8x16x128xf32, #tpu.memory_space<vmem>>) attributes {dimension_semantics = [#tpu.dimension_semantics<parallel>, #tpu.dimension_semantics<parallel>], iteration_bounds = array<i64: 2, 2>, scalar_prefetch = 0 : i64, scratch_operands = 0 : i64, tpu.core_type = #tpu.core_type<tc>, window_params = [{transform_indices = @transform_0, window_bounds = array<i64: 1, 18, 18, 4>}, {pipeline_mode = #tpu.pipeline_mode<synchronous>, transform_indices = @transform_1, window_bounds = array<i64: 3, 3, 4, 128>}, {pipeline_mode = #tpu.pipeline_mode<synchronous>, transform_indices = @transform_2, window_bounds = array<i64: 1, 128>}, {transform_indices = @transform_3, window_bounds = array<i64: 1, 8, 16, 128>}]} {
    %c8_i32 = arith.constant 8 : i32
    %0 = arith.muli %arg1, %c8_i32 : i32
    %1 = tpu.assume_multiple %0, 8 : i32
    %cst = arith.constant 0.000000e+00 : f32
    %2 = vector.broadcast %cst : f32 to vector<128x128xf32>
    %c0_i32 = arith.constant 0 : i32
    %3 = arith.addi %1, %c0_i32 : i32
    %c0 = arith.constant 0 : index
    %4 = arith.index_cast %3 : i32 to index
    %c0_0 = arith.constant 0 : index
    %c0_1 = arith.constant 0 : index
    %5 = vector.load %arg2[%c0, %4, %c0_0, %c0_1] : memref<1x18x18x4xbf16, #tpu.memory_space<vmem>>, vector<1x8x16x4xbf16>
    %6 = vector.shape_cast %5 : vector<1x8x16x4xbf16> to vector<8x16x4xbf16>
    %7 = vector.shape_cast %6 : vector<8x16x4xbf16> to vector<128x4xbf16>
    %c0_2 = arith.constant 0 : index
    %c0_3 = arith.constant 0 : index
    %c0_4 = arith.constant 0 : index
    %c0_5 = arith.constant 0 : index
    %8 = vector.load %arg3[%c0_2, %c0_3, %c0_4, %c0_5] : memref<3x3x4x128xbf16, #tpu.memory_space<vmem>>, vector<1x1x4x128xbf16>
    %9 = vector.shape_cast %8 : vector<1x1x4x128xbf16> to vector<4x128xbf16>
    %cst_6 = arith.constant dense<0.000000e+00> : vector<128x128xf32>
    %10 = tpu.matmul %7, %9, %cst_6 {dimension_numbers = #tpu.dot_dimension_numbers<[1], [0], [0], [1], [0, 0, 1, 1], [], []>} : vector<128x4xbf16>, vector<4x128xbf16>, vector<128x128xf32> -> vector<128x128xf32>
    %11 = arith.addf %2, %10 : vector<128x128xf32>
    %c0_i32_7 = arith.constant 0 : i32
    %12 = arith.addi %1, %c0_i32_7 : i32
    %c0_8 = arith.constant 0 : index
    %13 = arith.index_cast %12 : i32 to index
    %c1 = arith.constant 1 : index
    %c0_9 = arith.constant 0 : index
    %14 = vector.load %arg2[%c0_8, %13, %c1, %c0_9] : memref<1x18x18x4xbf16, #tpu.memory_space<vmem>>, vector<1x8x16x4xbf16>
    %15 = vector.shape_cast %14 : vector<1x8x16x4xbf16> to vector<8x16x4xbf16>
    %16 = vector.shape_cast %15 : vector<8x16x4xbf16> to vector<128x4xbf16>
    %c0_10 = arith.constant 0 : index
    %c1_11 = arith.constant 1 : index
    %c0_12 = arith.constant 0 : index
    %c0_13 = arith.constant 0 : index
    %17 = vector.load %arg3[%c0_10, %c1_11, %c0_12, %c0_13] : memref<3x3x4x128xbf16, #tpu.memory_space<vmem>>, vector<1x1x4x128xbf16>
    %18 = vector.shape_cast %17 : vector<1x1x4x128xbf16> to vector<4x128xbf16>
    %cst_14 = arith.constant dense<0.000000e+00> : vector<128x128xf32>
    %19 = tpu.matmul %16, %18, %cst_14 {dimension_numbers = #tpu.dot_dimension_numbers<[1], [0], [0], [1], [0, 0, 1, 1], [], []>} : vector<128x4xbf16>, vector<4x128xbf16>, vector<128x128xf32> -> vector<128x128xf32>
    %20 = arith.addf %11, %19 : vector<128x128xf32>
    %c0_i32_15 = arith.constant 0 : i32
    %21 = arith.addi %1, %c0_i32_15 : i32
    %c0_16 = arith.constant 0 : index
    %22 = arith.index_cast %21 : i32 to index
    %c2 = arith.constant 2 : index
    %c0_17 = arith.constant 0 : index
    %23 = vector.load %arg2[%c0_16, %22, %c2, %c0_17] : memref<1x18x18x4xbf16, #tpu.memory_space<vmem>>, vector<1x8x16x4xbf16>
    %24 = vector.shape_cast %23 : vector<1x8x16x4xbf16> to vector<8x16x4xbf16>
    %25 = vector.shape_cast %24 : vector<8x16x4xbf16> to vector<128x4xbf16>
    %c0_18 = arith.constant 0 : index
    %c2_19 = arith.constant 2 : index
    %c0_20 = arith.constant 0 : index
    %c0_21 = arith.constant 0 : index
    %26 = vector.load %arg3[%c0_18, %c2_19, %c0_20, %c0_21] : memref<3x3x4x128xbf16, #tpu.memory_space<vmem>>, vector<1x1x4x128xbf16>
    %27 = vector.shape_cast %26 : vector<1x1x4x128xbf16> to vector<4x128xbf16>
    %cst_22 = arith.constant dense<0.000000e+00> : vector<128x128xf32>
    %28 = tpu.matmul %25, %27, %cst_22 {dimension_numbers = #tpu.dot_dimension_numbers<[1], [0], [0], [1], [0, 0, 1, 1], [], []>} : vector<128x4xbf16>, vector<4x128xbf16>, vector<128x128xf32> -> vector<128x128xf32>
    %29 = arith.addf %20, %28 : vector<128x128xf32>
    %c1_i32 = arith.constant 1 : i32
    %30 = arith.addi %1, %c1_i32 : i32
    %c0_23 = arith.constant 0 : index
    %31 = arith.index_cast %30 : i32 to index
    %c0_24 = arith.constant 0 : index
    %c0_25 = arith.constant 0 : index
    %32 = vector.load %arg2[%c0_23, %31, %c0_24, %c0_25] : memref<1x18x18x4xbf16, #tpu.memory_space<vmem>>, vector<1x8x16x4xbf16>
    %33 = vector.shape_cast %32 : vector<1x8x16x4xbf16> to vector<8x16x4xbf16>
    %34 = vector.shape_cast %33 : vector<8x16x4xbf16> to vector<128x4xbf16>
    %c1_26 = arith.constant 1 : index
    %c0_27 = arith.constant 0 : index
    %c0_28 = arith.constant 0 : index
    %c0_29 = arith.constant 0 : index
    %35 = vector.load %arg3[%c1_26, %c0_27, %c0_28, %c0_29] : memref<3x3x4x128xbf16, #tpu.memory_space<vmem>>, vector<1x1x4x128xbf16>
    %36 = vector.shape_cast %35 : vector<1x1x4x128xbf16> to vector<4x128xbf16>
    %cst_30 = arith.constant dense<0.000000e+00> : vector<128x128xf32>
    %37 = tpu.matmul %34, %36, %cst_30 {dimension_numbers = #tpu.dot_dimension_numbers<[1], [0], [0], [1], [0, 0, 1, 1], [], []>} : vector<128x4xbf16>, vector<4x128xbf16>, vector<128x128xf32> -> vector<128x128xf32>
    %38 = arith.addf %29, %37 : vector<128x128xf32>
    %c1_i32_31 = arith.constant 1 : i32
    %39 = arith.addi %1, %c1_i32_31 : i32
    %c0_32 = arith.constant 0 : index
    %40 = arith.index_cast %39 : i32 to index
    %c1_33 = arith.constant 1 : index
    %c0_34 = arith.constant 0 : index
    %41 = vector.load %arg2[%c0_32, %40, %c1_33, %c0_34] : memref<1x18x18x4xbf16, #tpu.memory_space<vmem>>, vector<1x8x16x4xbf16>
    %42 = vector.shape_cast %41 : vector<1x8x16x4xbf16> to vector<8x16x4xbf16>
    %43 = vector.shape_cast %42 : vector<8x16x4xbf16> to vector<128x4xbf16>
    %c1_35 = arith.constant 1 : index
    %c1_36 = arith.constant 1 : index
    %c0_37 = arith.constant 0 : index
    %c0_38 = arith.constant 0 : index
    %44 = vector.load %arg3[%c1_35, %c1_36, %c0_37, %c0_38] : memref<3x3x4x128xbf16, #tpu.memory_space<vmem>>, vector<1x1x4x128xbf16>
    %45 = vector.shape_cast %44 : vector<1x1x4x128xbf16> to vector<4x128xbf16>
    %cst_39 = arith.constant dense<0.000000e+00> : vector<128x128xf32>
    %46 = tpu.matmul %43, %45, %cst_39 {dimension_numbers = #tpu.dot_dimension_numbers<[1], [0], [0], [1], [0, 0, 1, 1], [], []>} : vector<128x4xbf16>, vector<4x128xbf16>, vector<128x128xf32> -> vector<128x128xf32>
    %47 = arith.addf %38, %46 : vector<128x128xf32>
    %c1_i32_40 = arith.constant 1 : i32
    %48 = arith.addi %1, %c1_i32_40 : i32
    %c0_41 = arith.constant 0 : index
    %49 = arith.index_cast %48 : i32 to index
    %c2_42 = arith.constant 2 : index
    %c0_43 = arith.constant 0 : index
    %50 = vector.load %arg2[%c0_41, %49, %c2_42, %c0_43] : memref<1x18x18x4xbf16, #tpu.memory_space<vmem>>, vector<1x8x16x4xbf16>
    %51 = vector.shape_cast %50 : vector<1x8x16x4xbf16> to vector<8x16x4xbf16>
    %52 = vector.shape_cast %51 : vector<8x16x4xbf16> to vector<128x4xbf16>
    %c1_44 = arith.constant 1 : index
    %c2_45 = arith.constant 2 : index
    %c0_46 = arith.constant 0 : index
    %c0_47 = arith.constant 0 : index
    %53 = vector.load %arg3[%c1_44, %c2_45, %c0_46, %c0_47] : memref<3x3x4x128xbf16, #tpu.memory_space<vmem>>, vector<1x1x4x128xbf16>
    %54 = vector.shape_cast %53 : vector<1x1x4x128xbf16> to vector<4x128xbf16>
    %cst_48 = arith.constant dense<0.000000e+00> : vector<128x128xf32>
    %55 = tpu.matmul %52, %54, %cst_48 {dimension_numbers = #tpu.dot_dimension_numbers<[1], [0], [0], [1], [0, 0, 1, 1], [], []>} : vector<128x4xbf16>, vector<4x128xbf16>, vector<128x128xf32> -> vector<128x128xf32>
    %56 = arith.addf %47, %55 : vector<128x128xf32>
    %c2_i32 = arith.constant 2 : i32
    %57 = arith.addi %1, %c2_i32 : i32
    %c0_49 = arith.constant 0 : index
    %58 = arith.index_cast %57 : i32 to index
    %c0_50 = arith.constant 0 : index
    %c0_51 = arith.constant 0 : index
    %59 = vector.load %arg2[%c0_49, %58, %c0_50, %c0_51] : memref<1x18x18x4xbf16, #tpu.memory_space<vmem>>, vector<1x8x16x4xbf16>
    %60 = vector.shape_cast %59 : vector<1x8x16x4xbf16> to vector<8x16x4xbf16>
    %61 = vector.shape_cast %60 : vector<8x16x4xbf16> to vector<128x4xbf16>
    %c2_52 = arith.constant 2 : index
    %c0_53 = arith.constant 0 : index
    %c0_54 = arith.constant 0 : index
    %c0_55 = arith.constant 0 : index
    %62 = vector.load %arg3[%c2_52, %c0_53, %c0_54, %c0_55] : memref<3x3x4x128xbf16, #tpu.memory_space<vmem>>, vector<1x1x4x128xbf16>
    %63 = vector.shape_cast %62 : vector<1x1x4x128xbf16> to vector<4x128xbf16>
    %cst_56 = arith.constant dense<0.000000e+00> : vector<128x128xf32>
    %64 = tpu.matmul %61, %63, %cst_56 {dimension_numbers = #tpu.dot_dimension_numbers<[1], [0], [0], [1], [0, 0, 1, 1], [], []>} : vector<128x4xbf16>, vector<4x128xbf16>, vector<128x128xf32> -> vector<128x128xf32>
    %65 = arith.addf %56, %64 : vector<128x128xf32>
    %c2_i32_57 = arith.constant 2 : i32
    %66 = arith.addi %1, %c2_i32_57 : i32
    %c0_58 = arith.constant 0 : index
    %67 = arith.index_cast %66 : i32 to index
    %c1_59 = arith.constant 1 : index
    %c0_60 = arith.constant 0 : index
    %68 = vector.load %arg2[%c0_58, %67, %c1_59, %c0_60] : memref<1x18x18x4xbf16, #tpu.memory_space<vmem>>, vector<1x8x16x4xbf16>
    %69 = vector.shape_cast %68 : vector<1x8x16x4xbf16> to vector<8x16x4xbf16>
    %70 = vector.shape_cast %69 : vector<8x16x4xbf16> to vector<128x4xbf16>
    %c2_61 = arith.constant 2 : index
    %c1_62 = arith.constant 1 : index
    %c0_63 = arith.constant 0 : index
    %c0_64 = arith.constant 0 : index
    %71 = vector.load %arg3[%c2_61, %c1_62, %c0_63, %c0_64] : memref<3x3x4x128xbf16, #tpu.memory_space<vmem>>, vector<1x1x4x128xbf16>
    %72 = vector.shape_cast %71 : vector<1x1x4x128xbf16> to vector<4x128xbf16>
    %cst_65 = arith.constant dense<0.000000e+00> : vector<128x128xf32>
    %73 = tpu.matmul %70, %72, %cst_65 {dimension_numbers = #tpu.dot_dimension_numbers<[1], [0], [0], [1], [0, 0, 1, 1], [], []>} : vector<128x4xbf16>, vector<4x128xbf16>, vector<128x128xf32> -> vector<128x128xf32>
    %74 = arith.addf %65, %73 : vector<128x128xf32>
    %c2_i32_66 = arith.constant 2 : i32
    %75 = arith.addi %1, %c2_i32_66 : i32
    %c0_67 = arith.constant 0 : index
    %76 = arith.index_cast %75 : i32 to index
    %c2_68 = arith.constant 2 : index
    %c0_69 = arith.constant 0 : index
    %77 = vector.load %arg2[%c0_67, %76, %c2_68, %c0_69] : memref<1x18x18x4xbf16, #tpu.memory_space<vmem>>, vector<1x8x16x4xbf16>
    %78 = vector.shape_cast %77 : vector<1x8x16x4xbf16> to vector<8x16x4xbf16>
    %79 = vector.shape_cast %78 : vector<8x16x4xbf16> to vector<128x4xbf16>
    %c2_70 = arith.constant 2 : index
    %c2_71 = arith.constant 2 : index
    %c0_72 = arith.constant 0 : index
    %c0_73 = arith.constant 0 : index
    %80 = vector.load %arg3[%c2_70, %c2_71, %c0_72, %c0_73] : memref<3x3x4x128xbf16, #tpu.memory_space<vmem>>, vector<1x1x4x128xbf16>
    %81 = vector.shape_cast %80 : vector<1x1x4x128xbf16> to vector<4x128xbf16>
    %cst_74 = arith.constant dense<0.000000e+00> : vector<128x128xf32>
    %82 = tpu.matmul %79, %81, %cst_74 {dimension_numbers = #tpu.dot_dimension_numbers<[1], [0], [0], [1], [0, 0, 1, 1], [], []>} : vector<128x4xbf16>, vector<4x128xbf16>, vector<128x128xf32> -> vector<128x128xf32>
    %83 = arith.addf %74, %82 : vector<128x128xf32>
    %84 = vector.shape_cast %83 : vector<128x128xf32> to vector<8x16x128xf32>
    %c0_75 = arith.constant 0 : index
    %c0_76 = arith.constant 0 : index
    %85 = vector.load %arg4[%c0_75, %c0_76] : memref<1x128xf32, #tpu.memory_space<vmem>>, vector<1x128xf32>
    %86 = vector.shape_cast %85 : vector<1x128xf32> to vector<1x1x128xf32>
    %87 = vector.broadcast %86 : vector<1x1x128xf32> to vector<8x16x128xf32>
    %88 = arith.addf %84, %87 : vector<8x16x128xf32>
    %c0_77 = arith.constant 0 : index
    %c0_78 = arith.constant 0 : index
    %c0_79 = arith.constant 0 : index
    %c0_80 = arith.constant 0 : index
    %89 = vector.load %arg5[%c0_77, %c0_78, %c0_79, %c0_80] : memref<1x8x16x128xf32, #tpu.memory_space<vmem>>, vector<1x8x16x128xf32>
    %90 = vector.shape_cast %89 : vector<1x8x16x128xf32> to vector<8x16x128xf32>
    %91 = vector.shape_cast %88 : vector<8x16x128xf32> to vector<1x8x16x128xf32>
    tpu.vector_store %arg5[%c0_77, %c0_78, %c0_79, %c0_80], %91 {strides = array<i32>} : memref<1x8x16x128xf32, #tpu.memory_space<vmem>>, vector<1x8x16x128xf32>,
    return
  }
  func.func @transform_0(%arg0: i32, %arg1: i32) -> (i32, i32, i32, i32) {
    %c0_i32 = arith.constant 0 : i32
    %c0_i32_0 = arith.constant 0 : i32
    %c0_i32_1 = arith.constant 0 : i32
    %c0_i32_2 = arith.constant 0 : i32
    return %arg0, %c0_i32, %c0_i32_0, %c0_i32_1 : i32, i32, i32, i32
  }
  func.func @transform_1(%arg0: i32, %arg1: i32) -> (i32, i32, i32, i32) {
    %c0_i32 = arith.constant 0 : i32
    %c0_i32_0 = arith.constant 0 : i32
    %c0_i32_1 = arith.constant 0 : i32
    %c0_i32_2 = arith.constant 0 : i32
    %c0_i32_3 = arith.constant 0 : i32
    return %c0_i32, %c0_i32_0, %c0_i32_1, %c0_i32_2 : i32, i32, i32, i32
  }
  func.func @transform_2(%arg0: i32, %arg1: i32) -> (i32, i32) {
    %c0_i32 = arith.constant 0 : i32
    %c0_i32_0 = arith.constant 0 : i32
    %c0_i32_1 = arith.constant 0 : i32
    return %c0_i32, %c0_i32_0 : i32, i32
  }
  func.func @transform_3(%arg0: i32, %arg1: i32) -> (i32, i32, i32, i32) {
    %c0_i32 = arith.constant 0 : i32
    %c0_i32_0 = arith.constant 0 : i32
    %c0_i32_1 = arith.constant 0 : i32
    return %arg0, %arg1, %c0_i32, %c0_i32_0 : i32, i32, i32, i32
  }
}

</mosaic_0001>

<bundles_post_ra>
// kernel: conv_layer.1
= control target key start
LH: loop header
LB: loop body
LE: loop exit
PB: predicated region body
PF: predicated region fallthrough
CT: control target
= control target key end

     0   :  { %s3603_s12 = smov 0   ;;  %s3605_s13 = smov 0   ;;  %s4558_s0 = inlined_call_operand.vmem [shape: bf16[2,18,18,4], index: 0, kind: input, shape index: {}]   ;;  %s4559_s1 = inlined_call_operand.vmem [shape: bf16[3,3,4,128], index: 1, kind: input, shape index: {}]   ;;  %s4560_s2 = inlined_call_operand.vmem [shape: f32[1,128], index: 2, kind: input, shape index: {}]   ;;  %s4561_s3 = inlined_call_operand.vmem [shape: f32[2,16,16,128], index: 3, kind: output, shape index: {}]  }
   0x1   :  { %s3607_s14 = smov 0   ;;  %s3609_s15 = smov 0  }
   0x2   :  { %s3611_s16 = smov 0  }
   0x3 LB: > { %s22_s17 = sadd.s32 1, %s3573_s14  ;;  %s25_s18 = sadd.s32 1, %s3577_s15  ;;  %s3581_s16 = sphi %s3611_s16, %s13_s16   ;;  %s3577_s15 = sphi %s3609_s15, %s4587_s15   ;;  %s3573_s14 = sphi %s3607_s14, %s4586_s14   ;;  %s3569_s13 = sphi %s3605_s13, %s4585_s13   ;;  %s3565_s12 = sphi %s3603_s12, %s4584_s12  }
   0x4   : > { %p23_p0 = scmp.ge.s32.totalorder %s22_s17, 2  ;;  %p2805_p1 = scmp.ge.s32.totalorder %s3581_s16, 1 }
   0x5   : > { %p151_p2 = scmp.lt.s32.totalorder %s3581_s16, 5 }
   0x6   : > { %s4589_s17 = smov (%p23_p0, %s22_s17), 0  ;;  %s4591_s18 = smov (!%p23_p0, %s25_s18), %s3577_s15 }
   0x7   : > { %p152_p3 = pnand %p2805_p1, %p151_p2  ;;  %p27_p4 = scmp.ge.s32.totalorder %s4591_s18, 2 }
   0x9   : > { %s4593_s18 = smov (%p27_p4, %s4591_s18), 0  ;;  %155 = sbr.rel (%p152_p3) target bundleno = 419 (0x1a3), region = 32 }
  0x10   : > { %v2814_v0 = vld [vmem:[%s4559_s1 + $0x2] sm:$0x3]  ;;  %vm472_vm0 = vcmask 1041408   ;;  %v2931_v1 = vld [vmem:[%s4559_s1 + $0x8] sm:$0x3]  ;;  %p180_p5 = scmp.lt.s32.totalorder %s3569_s13, 1 }
  0x11   : > { %3467 = vmatprep.subr.msk.bf16.mxu1 %vm472_vm0, %v2814_v0  ;;  %3471 = vmatprep.subr.msk.bf16.mxu0 %vm472_vm0, %v2931_v1  ;;  %v474_v2 = vsel %vm472_vm0, %v2814_v0, 0  ;;  %v3645_v3 = vsel %vm472_vm0, %v2931_v1, 0  ;;  %v217_v4 = vld [vmem:[%s4559_s1] sm:$0x3]  ;;  %s3093_s25 = smul.u32 96, %s3565_s12  ;;  %vm447_vm3 = vcmask 31744  }
  0x12   : > { %3176 = vmatpush3.bf16.msra.mxu1 %v474_v2  ;;  %3248 = vmatpush3.bf16.msra.mxu0 %v3645_v3  ;;  %s4595_s13 = smov (!%p180_p5, %s3569_s13), 1  ;;  %v2964_v5 = vld [vmem:[%s4559_s1 + $0xa] sm:$0x3]  ;;  %vm226_vm1 = vsmask.f32 3328  ;;  %v3687_v17 = vsel %vm472_vm0, %v217_v4, 0 }
  0x13   : > { %3468 = vmatprep.subr.msk.bf16.mxu1 %vm472_vm0, %v217_v4  ;;  %s3477_s28 = smul.u32 216, %s4595_s13  ;;  %3473 = vmatprep.subr.msk.bf16.mxu0 %vm472_vm0, %v2964_v5  ;;  %vm227_vm2 = vsmask.f32 7440  ;;  %v3693_v26 = vld [vmem:[%s4559_s1 + $0xc] sm:$0x3]  ;;  %v3710_v37 = vsel %vm472_vm0, %v2964_v5, 0 }
  0x14   : > { %vm3702_vm4 = vmor %vm226_vm1, %vm227_vm2  ;;  %v3714_v41 = vsel %vm472_vm0, %v3693_v26, 0  ;;  %vm761_vm5 = vcmask 1042432   ;;  %vm762_vm6 = vcmask 1046532   ;;  %s2809_s27 = sshll.u32 %s4595_s13, 5 }
  0x15   : > { %s184_s4 = scalar_lea.vmem %s4558_s0, %s3477_s28  ;;  %vm3857_vm7 = vmor %vm761_vm5, %vm762_vm6 }
  0x16   : > { %s3663_s5 = scalar_lea.vmem %s184_s4, %s3093_s25  ;;  %s2807_s25 = sshll.u32 %s3565_s12, 3 }
  0x17   : > { %v3666_v6 = vld [vmem:[%s3663_s5] sm:$0xf]  ;;  %v3669_v7 = vld [vmem:[%s3663_s5 + $0x4] sm:$0xf]  ;;  %v3672_v8 = vld [vmem:[%s3663_s5 + $0x8] sm:$0x1] }
  0x18   : > { %v230_v9 = vshrl.u32 %v3666_v6, 16  ;;  %v233_v10 = vshll.u32 %v3666_v6, 16  ;;  %v239_v11 = vshll.u32 %v3669_v7, 16  ;;  %v243_v12 = vshrl.u32 %v3669_v7, 16  ;;  %v2907_v13 = vld [vmem:[%s3663_s5 + $0xc] sm:$0xf] }
  0x19   : > { %v249_v14 = vshll.u32 %v3672_v8, 16  ;;  %v3681_v15 = vld [vmem:[%s3663_s5 + $0x10] sm:$0xf]  ;;  %v3684_v16 = vld [vmem:[%s3663_s5 + $0x14] sm:$0x1]  ;;  %v1213_v23 = vshrl.u32 %v2907_v13, 16 }
  0x1a   : > { %v232_v18 = vrot.slane %v230_v9, 4  ;;  %v235_v19 = vrot.slane %v233_v10, 5  ;;  %v241_v20 = vrot.slane %v239_v11, 5  ;;  %v245_v21 = vrot.slane %v243_v12, 4  ;;  %v3698_v31 = vld [vmem:[%s3663_s5 + $0xc] sm:$0xf] }
  0x1b   : > { %v251_v22 = vrot.slane %v249_v14, 5  ;;  %v1216_v24 = vshll.u32 %v2907_v13, 16  ;;  %v1222_v25 = vshll.u32 %v3681_v15, 16  ;;  %v1226_v29 = vshrl.u32 %v3681_v15, 16  ;;  %v3707_v36 = vld [vmem:[%s3663_s5 + $0x10] sm:$0xf] }
  0x1c   : > { %v236_v27 = vor.u32 %v235_v19, %v232_v18  ;;  %v246_v28 = vor.u32 %v245_v21, %v241_v20  ;;  %v1232_v30 = vshll.u32 %v3684_v16, 16  ;;  %v1215_v33 = vrot.slane %v1213_v23, 4  ;;  %v3717_v44 = vld [vmem:[%s3663_s5 + $0x14] sm:$0x1]  ;;  %v2910_v55 = vld [vmem:[%s3663_s5 + $0x18] sm:$0xf] }
  0x1d   : > { %v1218_v34 = vrot.slane %v1216_v24, 5  ;;  %v1224_v35 = vrot.slane %v1222_v25, 5  ;;  %v1228_v40 = vrot.slane %v1226_v29, 4  ;;  %v254_v45 = vshrl.u32 %v3698_v31, 16  ;;  %v3730_v60 = vld [vmem:[%s3663_s5 + $0x1c] sm:$0xf] }
  0x1e   : > { %v237_v38 = vrot.slane %v236_v27, 4  ;;  %v247_v39 = vrot.slane %v246_v28, 4  ;;  %v1234_v43 = vrot.slane %v1232_v30, 5  ;;  %v257_v46 = vshll.u32 %v3698_v31, 16  ;;  %v3738_v1 = vld [vmem:[%s3663_s5 + $0x20] sm:$0x1] }
  0x1f   : > { %v1219_v42 = vor.u32 %v1218_v34, %v1215_v33  ;;  %v1229_v49 = vor.u32 %v1228_v40, %v1224_v35  ;;  %v263_v50 = vshll.u32 %v3707_v36, 16  ;;  %v256_v53 = vrot.slane %v254_v45, 4  ;;  %v3746_v21 = vld [vmem:[%s3663_s5 + $0x18] sm:$0xf]  ;;  %v3753_v27 = vld [vmem:[%s3663_s5 + $0x1c] sm:$0xf] }
  0x20   : > { %v242_v47 = vsel %vm3702_vm4, %v237_v38, %v241_v20  ;;  %v252_v48 = vsel %vm3702_vm4, %v247_v39, %v251_v22  ;;  %v259_v54 = vrot.slane %v257_v46, 5  ;;  %v267_v58 = vshrl.u32 %v3707_v36, 16  ;;  %v3761_v38 = vld [vmem:[%s3663_s5 + $0x20] sm:$0x1]  ;;  %p188_p6 = scmp.lt.s32.totalorder %s2807_s25, 15 }
  0x21   : > { %v2815_v51 = vcombine.low %v242_v47, %v252_v48  ;;  %v1220_v52 = vrot.slane %v1219_v42, 4  ;;  %v1230_v56 = vrot.slane %v1229_v49, 4  ;;  %v265_v57 = vrot.slane %v263_v50, 5  ;;  %v2913_v47 = vld [vmem:[%s3663_s5 + $0x24] sm:$0xf] }
  0x22   : > { %v273_v59 = vshll.u32 %v3717_v44, 16  ;;  %v1604_v62 = vrot.slane %v3681_v15, 5  ;;  %v1607_v63 = vrot.slane %v3684_v16, 5  ;;  %v260_v0 = vor.u32 %v259_v54, %v256_v53  ;;  %s4597_s25 = smov (!%p188_p6, %s2807_s25), 15 }
  0x23   : > { %3177 = vmatprep.mubr.msk.bf16.mxu1 %vm447_vm3, %v2815_v51  ;;  %v1225_v61 = vsel %vm3702_vm4, %v1220_v52, %v1224_v35  ;;  %v1235_v2 = vsel %vm3702_vm4, %v1230_v56, %v1234_v43  ;;  %v269_v4 = vrot.slane %v267_v58, 4  ;;  %v1237_v9 = vshrl.u32 %v2910_v55, 16  ;;  %v3771_v52 = vld [vmem:[%s3663_s5 + $0x28] sm:$0xf]  ;;  %s2808_s26 = sshll.u32 %s4597_s25, 1 }
  0x24   : > { %v275_v5 = vrot.slane %v273_v59, 5  ;;  %v2932_v10 = vcombine.low %v1225_v61, %v1235_v2  ;;  %v261_v11 = vrot.slane %v260_v0, 4  ;;  %v1240_v12 = vshll.u32 %v2910_v55, 16  ;;  %v3783_v61 = vld [vmem:[%s3663_s5 + $0x2c] sm:$0x1]  ;;  %s192_s28 = sadd.s32 %s2809_s27, %s2808_s26 }
  0x25   : > { %v1246_v13 = vshll.u32 %v3730_v60, 16  ;;  %v270_v14 = vor.u32 %v269_v4, %v265_v57  ;;  %v1239_v18 = vrot.slane %v1237_v9, 4  ;;  %v1250_v19 = vshrl.u32 %v3730_v60, 16  ;;  %s2810_s29 = sshll.u32 %s192_s28, 3 }
  0x26   : > { %v1256_v20 = vshll.u32 %v3738_v1, 16  ;;  %3249 = vmatprep.mubr.msk.bf16.mxu0 %vm447_vm3, %v2932_v10  ;;  %v266_v22 = vsel %vm3702_vm4, %v261_v11, %v265_v57  ;;  %v1242_v23 = vrot.slane %v1240_v12, 5  ;;  %v1611_v25 = vrot.slane %v3730_v60, 5  ;;  %v3777_v57 = vld [vmem:[%s4559_s1 + $0x4] sm:$0x3]  ;;  %s4509_s6 = scalar_lea.vmem %s4561_s3, %s2810_s29 }
  0x27   : > { %v1248_v24 = vrot.slane %v1246_v13, 5  ;;  %v271_v28 = vrot.slane %v270_v14, 4  ;;  %v1252_v29 = vrot.slane %v1250_v19, 4  ;;  %v1614_v33 = vrot.slane %v3738_v1, 5  ;;  %v3790_v11 = vld [vmem:[%s3663_s5 + $0x24] sm:$0xf] }
  0x28   : > { %v1258_v30 = vrot.slane %v1256_v20, 5  ;;  %v1243_v34 = vor.u32 %v1242_v23, %v1239_v18  ;;  %v3758_v35 = vrot.slane %v1611_v25, 4  ;;  %v278_v39 = vshrl.u32 %v3746_v21, 16  ;;  %v3793_v19 = vld [vmem:[%s3663_s5 + $0x28] sm:$0xf] }
  0x29   : > { %v281_v40 = vshll.u32 %v3746_v21, 16  ;;  %v276_v42 = vsel %vm3702_vm4, %v271_v28, %v275_v5  ;;  %v1253_v43 = vor.u32 %v1252_v29, %v1248_v24  ;;  %v287_v45 = vshll.u32 %v3753_v27, 16  ;;  %v3803_v29 = vld [vmem:[%s3663_s5 + $0x2c] sm:$0x1] }
  0x2a   : > { %v291_v46 = vshrl.u32 %v3753_v27, 16  ;;  %v2816_v48 = vcombine.low %v266_v22, %v276_v42  ;;  %v1244_v49 = vrot.slane %v1243_v34, 4  ;;  %v280_v50 = vrot.slane %v278_v39, 4 }
  0x2b   : > { %v283_v51 = vrot.slane %v281_v40, 5  ;;  %v1254_v53 = vrot.slane %v1253_v43, 4  ;;  %v289_v54 = vrot.slane %v287_v45, 5  ;;  %v297_v56 = vshll.u32 %v3761_v38, 16  ;;  %v2916_v45 = vld [vmem:[%s3663_s5 + $0x30] sm:$0xf] }
  0x2c   : > { %v293_v55 = vrot.slane %v291_v46, 4  ;;  %3178 = vmatmul.mubr.msk.bf16.vlgmr.msra.gmra.mrb[0].mxu1 %vm447_vm3, %v2816_v48  ;;  %v1249_v58 = vsel %vm3702_vm4, %v1244_v49, %v1248_v24  ;;  %v1261_v0 = vshrl.u32 %v2913_v47, 16  ;;  %v1264_v2 = vshll.u32 %v2913_v47, 16 }
  0x2d   : > { %v284_v59 = vor.u32 %v283_v51, %v280_v50  ;;  %3194 = vmatpush3.bf16.msra.mxu1 %v3687_v17  ;;  %v1259_v4 = vsel %vm3702_vm4, %v1254_v53, %v1258_v30  ;;  %v299_v9 = vrot.slane %v297_v56, 5  ;;  %v1270_v10 = vshll.u32 %v3771_v52, 16  ;;  %v3813_v50 = vld [vmem:[%s3663_s5 + $0x34] sm:$0xf] }
  0x2e   : > { %v294_v5 = vor.u32 %v293_v55, %v289_v54  ;;  %v2933_v12 = vcombine.low %v1249_v58, %v1259_v4  ;;  %v1263_v14 = vrot.slane %v1261_v0, 4  ;;  %v1266_v18 = vrot.slane %v1264_v2, 5  ;;  %3469 = vmatprep.subr.msk.bf16.mxu1 %vm472_vm0, %v3777_v57  ;;  %v3823_v58 = vld [vmem:[%s3663_s5 + $0x38] sm:$0x1] }
  0x2f   : > { %v285_v13 = vrot.slane %v284_v59, 4  ;;  %v1272_v20 = vrot.slane %v1270_v10, 5  ;;  %v1274_v22 = vshrl.u32 %v3771_v52, 16  ;;  %v1280_v23 = vshll.u32 %v3783_v61, 16 }
  0x30   : > { %v295_v17 = vrot.slane %v294_v5, 4  ;;  %3250 = vmatmul.mubr.msk.bf16.vlgmr.msra.gmra.mrb[0].mxu0 %vm447_vm3, %v2933_v12  ;;  %v1267_v28 = vor.u32 %v1266_v18, %v1263_v14  ;;  %v302_v30 = vshrl.u32 %v3790_v11, 16  ;;  %v305_v34 = vshll.u32 %v3790_v11, 16  ;;  %v3828_v14 = vld [vmem:[%s3663_s5 + $0x30] sm:$0xf] }
  0x31   : > { %v290_v24 = vsel %vm3702_vm4, %v285_v13, %v289_v54  ;;  %3266 = vmatpush3.bf16.msra.mxu0 %v3710_v37  ;;  %v1276_v40 = vrot.slane %v1274_v22, 4  ;;  %v1282_v42 = vrot.slane %v1280_v23, 5  ;;  %v311_v43 = vshll.u32 %v3793_v19, 16  ;;  %v3834_v23 = vld [vmem:[%s3663_s5 + $0x34] sm:$0xf] }
  0x32   : > { %v300_v39 = vsel %vm3702_vm4, %v295_v17, %v299_v9  ;;  %v1268_v47 = vrot.slane %v1267_v28, 4  ;;  %v304_v48 = vrot.slane %v302_v30, 4  ;;  %v307_v49 = vrot.slane %v305_v34, 5  ;;  %3474 = vmatprep.subr.msk.bf16.mxu0 %vm472_vm0, %v3693_v26 }
  0x33   : > { %v2817_v46 = vcombine.low %v290_v24, %v300_v39  ;;  %v1277_v37 = vor.u32 %v1276_v40, %v1272_v20  ;;  %v313_v51 = vrot.slane %v311_v43, 5  ;;  %v315_v53 = vshrl.u32 %v3793_v19, 16  ;;  %v3839_v39 = vld [vmem:[%s3663_s5 + $0x38] sm:$0x1] }
  0x34   : > { %v321_v54 = vshll.u32 %v3803_v29, 16  ;;  %v1273_v55 = vsel %vm3702_vm4, %v1268_v47, %v1272_v20  ;;  %v308_v56 = vor.u32 %v307_v49, %v304_v48  ;;  %v1285_v59 = vshrl.u32 %v2916_v45, 16 }
  0x35   : > { %3181 = vmatprep.mubr.msk.bf16.mxu1 %vm447_vm3, %v2817_v46  ;;  %v1288_v0 = vshll.u32 %v2916_v45, 16  ;;  %v1278_v2 = vrot.slane %v1277_v37, 4  ;;  %v317_v26 = vrot.slane %v315_v53, 4  ;;  %v1294_v5 = vshll.u32 %v3813_v50, 16  ;;  %v2948_v37 = vld [vmem:[%s3663_s5 + $0xc] sm:$0xe] }
  0x36   : > { %v323_v4 = vrot.slane %v321_v54, 5  ;;  %v309_v9 = vrot.slane %v308_v56, 4  ;;  %v1287_v10 = vrot.slane %v1285_v59, 4  ;;  %v1298_v13 = vshrl.u32 %v3813_v50, 16  ;;  %v3851_v56 = vld [vmem:[%s3663_s5 + $0x3c] sm:$0xf] }
  0x37   : > { %v1290_v12 = vrot.slane %v1288_v0, 5  ;;  %v1283_v18 = vsel %vm3702_vm4, %v1278_v2, %v1282_v42  ;;  %v318_v17 = vor.u32 %v317_v26, %v313_v51  ;;  %v1296_v20 = vrot.slane %v1294_v5, 5 }
  0x38   : > { %v1304_v22 = vshll.u32 %v3823_v58, 16  ;;  %v2934_v24 = vcombine.low %v1273_v55, %v1283_v18  ;;  %v314_v28 = vsel %vm3702_vm4, %v309_v9, %v313_v51  ;;  %v1300_v34 = vrot.slane %v1298_v13, 4  ;;  %v3865_v18 = vld [vmem:[%s3663_s5 + $0x44] sm:$0x1] }
  0x39   : > { %v1291_v30 = vor.u32 %v1290_v12, %v1287_v10  ;;  %v319_v40 = vrot.slane %v318_v17, 4  ;;  %v326_v42 = vshrl.u32 %v3828_v14, 16  ;;  %v329_v45 = vshll.u32 %v3828_v14, 16  ;;  %v2949_v17 = vld [vmem:[%s3663_s5 + $0x18] sm:$0xe] }
  0x3a   : > { %v1306_v43 = vrot.slane %v1304_v22, 5  ;;  %3253 = vmatprep.mubr.msk.bf16.mxu0 %vm447_vm3, %v2934_v24  ;;  %v1301_v47 = vor.u32 %v1300_v34, %v1296_v20  ;;  %v335_v48 = vshll.u32 %v3834_v23, 16  ;;  %v339_v49 = vshrl.u32 %v3834_v23, 16 }
  0x3b   : > { %v1292_v46 = vrot.slane %v1291_v30, 4  ;;  %v324_v51 = vsel %vm3702_vm4, %v319_v40, %v323_v4  ;;  %v328_v53 = vrot.slane %v326_v42, 4  ;;  %v331_v54 = vrot.slane %v329_v45, 5  ;;  %v3862_v4 = vld [vmem:[%s3663_s5 + $0x40] sm:$0xf] }
  0x3c   : > { %v345_v55 = vshll.u32 %v3839_v39, 16  ;;  %v2818_v59 = vcombine.low %v314_v28, %v324_v51  ;;  %v1302_v2 = vrot.slane %v1301_v47, 4  ;;  %v337_v26 = vrot.slane %v335_v48, 5  ;;  %v3876_v30 = vld [vmem:[%s3663_s5 + $0x48] sm:$0xf] }
  0x3d   : > { %v1297_v0 = vsel %vm3702_vm4, %v1292_v46, %v1296_v20  ;;  %v332_v9 = vor.u32 %v331_v54, %v328_v53  ;;  %v341_v10 = vrot.slane %v339_v49, 4  ;;  %v2956_v13 = vrot.slane %v2948_v37, 9 }
  0x3e   : > { %v347_v12 = vrot.slane %v345_v55, 5  ;;  %3182 = vmatmul.mubr.msk.bf16.gmra.mrb[4].mxu1 %vm447_vm3, %v2818_v59  ;;  %v1307_v20 = vsel %vm3702_vm4, %v1302_v2, %v1306_v43  ;;  %v1606_v22 = vrot.slane %v1604_v62, 4  ;;  %v350_v24 = vshrl.u32 %v3851_v56, 16  ;;  %v3896_v55 = vld [vmem:[%s3663_s5 + $0x50] sm:$0x1] }
  0x3f   : > { %v353_v28 = vshll.u32 %v3851_v56, 16  ;;  %v2935_v34 = vcombine.low %v1297_v0, %v1307_v20  ;;  %v333_v40 = vrot.slane %v332_v9, 4  ;;  %v342_v42 = vor.u32 %v341_v10, %v337_v26 }
  0x40   : > { %v1605_v45 = vsel %vm3857_vm7, %v2956_v13, %v1604_v62  ;;  %v1608_v43 = vsel %vm3857_vm7, %v1606_v22, %v1607_v63  ;;  %v352_v46 = vrot.slane %v350_v24, 4  ;;  %v359_v48 = vshll.u32 %v3862_v4, 16  ;;  %v3892_v62 = vld [vmem:[%s3663_s5 + $0x4c] sm:$0xf] }
  0x41   : > { %v355_v47 = vrot.slane %v353_v28, 5  ;;  %3254 = vmatmul.mubr.msk.bf16.gmra.mrb[4].mxu0 %vm447_vm3, %v2935_v34  ;;  %v338_v49 = vsel %vm3702_vm4, %v333_v40, %v337_v26  ;;  %v343_v37 = vrot.slane %v342_v42, 4  ;;  %v2965_v15 = vcombine.low %v1605_v45, %v1608_v43  ;;  %v3914_v28 = vld [vmem:[%s3663_s5 + $0x54] sm:$0xf]  ;;  %v3925_v34 = vld [vmem:[%s4559_s1 + $0xe] sm:$0x3] }
  0x42   : > { %v363_v51 = vshrl.u32 %v3862_v4, 16  ;;  %v361_v53 = vrot.slane %v359_v48, 5  ;;  %v369_v63 = vshll.u32 %v3865_v18, 16  ;;  %v2957_v54 = vrot.slane %v2949_v17, 9 }
  0x43   : > { %v356_v16 = vor.u32 %v355_v47, %v352_v46  ;;  %v348_v59 = vsel %vm3702_vm4, %v343_v37, %v347_v12  ;;  %3267 = vmatprep.mubr.msk.bf16.mxu0 %vm447_vm3, %v2965_v15  ;;  %v1615_v2 = vsel %vm3857_vm7, %v3758_v35, %v1614_v33  ;;  %v374_v26 = vshrl.u32 %v3876_v30, 16  ;;  %v2950_v12 = vld [vmem:[%s3663_s5 + $0x24] sm:$0xe]  ;;  %v3930_v37 = vld [vmem:[%s3663_s5 + $0x58] sm:$0xf] }
  0x44   : > { %v365_v0 = vrot.slane %v363_v51, 4  ;;  %v2819_v9 = vcombine.low %v338_v49, %v348_v59  ;;  %v371_v13 = vrot.slane %v369_v63, 5  ;;  %v1612_v17 = vsel %vm3857_vm7, %v2957_v54, %v1611_v25  ;;  %v3939_v54 = vld [vmem:[%s3663_s5 + $0x5c] sm:$0x1] }
  0x45   : > { %v357_v10 = vrot.slane %v356_v16, 4  ;;  %v2966_v22 = vcombine.low %v1612_v17, %v1615_v2  ;;  %v376_v24 = vrot.slane %v374_v26, 4  ;;  %v377_v1 = vshll.u32 %v3876_v30, 16 }
  0x46   : > { %v366_v20 = vor.u32 %v365_v0, %v361_v53  ;;  %3185 = vmatprep.mubr.msk.bf16.mxu1 %vm447_vm3, %v2819_v9  ;;  %v383_v35 = vshll.u32 %v3892_v62, 16  ;;  %v387_v60 = vshrl.u32 %v3892_v62, 16  ;;  %v393_v25 = vshll.u32 %v3896_v55, 16 }
  0x47   : > { %v362_v33 = vsel %vm3702_vm4, %v357_v10, %v361_v53  ;;  %v379_v42 = vrot.slane %v377_v1, 5  ;;  %v2958_v45 = vrot.slane %v2950_v12, 9  ;;  %v1618_v43 = vrot.slane %v3771_v52, 5  ;;  %v2951_v10 = vld [vmem:[%s3663_s5 + $0x30] sm:$0xe] }
  0x48   : > { %v367_v40 = vrot.slane %v366_v20, 4  ;;  %v385_v46 = vrot.slane %v383_v35, 5  ;;  %v389_v47 = vrot.slane %v387_v60, 4  ;;  %v395_v48 = vrot.slane %v393_v25, 5 }
  0x49   : > { %v1621_v49 = vrot.slane %v3783_v61, 5  ;;  %3268 = vmatmul.mubr.msk.bf16.vlgmr.msra.gmra.mrb[0].mxu0 %vm447_vm3, %v2966_v22  ;;  %v380_v51 = vor.u32 %v379_v42, %v376_v24  ;;  %v1619_v16 = vsel %vm3857_vm7, %v2958_v45, %v1618_v43  ;;  %v1620_v53 = vrot.slane %v1618_v43, 4  ;;  %v3960_v42 = vld [vmem:[%s3663_s5 + $0x40] sm:$0xf]  ;;  %v3963_v45 = vld [vmem:[%s3663_s5 + $0x44] sm:$0x1] }
  0x4a   : > { %v372_v15 = vsel %vm3702_vm4, %v367_v40, %v371_v13  ;;  %3284 = vmatpush3.bf16.msra.mxu0 %v3714_v41  ;;  %v390_v52 = vor.u32 %v389_v47, %v385_v46  ;;  %v398_v61 = vshrl.u32 %v3914_v28, 16  ;;  %v401_v59 = vshll.u32 %v3914_v28, 16 }
  0x4b   : > { %v2820_v63 = vcombine.low %v362_v33, %v372_v15  ;;  %v381_v0 = vrot.slane %v380_v51, 4  ;;  %v1622_v2 = vsel %vm3857_vm7, %v1620_v53, %v1621_v49  ;;  %v407_v26 = vshll.u32 %v3930_v37, 16  ;;  %3475 = vmatprep.subr.msk.bf16.mxu0 %vm472_vm0, %v3925_v34  ;;  %v2952_v33 = vld [vmem:[%s3663_s5 + $0x3c] sm:$0xe] }
  0x4c   : > { %v411_v9 = vshrl.u32 %v3930_v37, 16  ;;  %v391_v41 = vrot.slane %v390_v52, 4  ;;  %v2967_v13 = vcombine.low %v1619_v16, %v1622_v2  ;;  %v400_v17 = vrot.slane %v398_v61, 4  ;;  %v2953_v2 = vld [vmem:[%s3663_s5 + $0x48] sm:$0xe] }
  0x4d   : > { %3186 = vmatmul.mubr.msk.bf16.gmra.mrb[8].mxu1 %vm447_vm3, %v2820_v63  ;;  %v403_v12 = vrot.slane %v401_v59, 5  ;;  %v386_v20 = vsel %vm3702_vm4, %v381_v0, %v385_v46  ;;  %v409_v22 = vrot.slane %v407_v26, 5  ;;  %v417_v1 = vshll.u32 %v3939_v54, 16  ;;  %v3978_v59 = vld [vmem:[%s3663_s5 + $0x4c] sm:$0xf] }
  0x4e   : > { %v413_v24 = vrot.slane %v411_v9, 4  ;;  %v396_v35 = vsel %vm3702_vm4, %v391_v41, %v395_v48  ;;  %3271 = vmatprep.mubr.msk.bf16.mxu0 %vm447_vm3, %v2967_v13  ;;  %v2959_v25 = vrot.slane %v2951_v10, 9  ;;  %v1625_v40 = vrot.slane %v3813_v50, 5  ;;  %v3981_v0 = vld [vmem:[%s3663_s5 + $0x50] sm:$0x1] }
  0x4f   : > { %v404_v60 = vor.u32 %v403_v12, %v400_v17  ;;  %v2821_v43 = vcombine.low %v386_v20, %v396_v35  ;;  %v419_v47 = vrot.slane %v417_v1, 5  ;;  %v1628_v49 = vrot.slane %v3823_v58, 5  ;;  %v3989_v17 = vld [vmem:[%s3663_s5 + $0x58] sm:$0xf]  ;;  %v3992_v12 = vld [vmem:[%s3663_s5 + $0x5c] sm:$0x1] }
  0x50   : > { %v414_v46 = vor.u32 %v413_v24, %v409_v22  ;;  %v1626_v48 = vsel %vm3857_vm7, %v2959_v25, %v1625_v40  ;;  %v1627_v51 = vrot.slane %v1625_v40, 4  ;;  %v2960_v16 = vrot.slane %v2952_v33, 9  ;;  %4571 = vst [vmem:[#allocation2_spill] sm:$0xff] %v3992_v12  ;;  %v4002_v35 = vld [vmem:[%s3663_s5 + $0x64] sm:$0xf] }
  0x51   : > { %v405_v15 = vrot.slane %v404_v60, 4  ;;  %3189 = vmatprep.mubr.msk.bf16.mxu1 %vm447_vm3, %v2821_v43  ;;  %v1632_v53 = vrot.slane %v3960_v42, 5  ;;  %v1635_v63 = vrot.slane %v3963_v45, 5  ;;  %v2831_v61 = vcombine.low %v3666_v6, %v3669_v7  ;;  %v2954_v6 = vld [vmem:[%s3663_s5 + $0x54] sm:$0xe]  ;;  %4572 = vst [vmem:[#allocation3_spill] sm:$0xff] %v4002_v35 }
  0x52   : > { %v415_v50 = vrot.slane %v414_v46, 4  ;;  %v1629_v58 = vsel %vm3857_vm7, %v1627_v51, %v1628_v49  ;;  %v1639_v24 = vrot.slane %v3978_v59, 5  ;;  %v1642_v1 = vrot.slane %v3981_v0, 5  ;;  %v4005_v60 = vld [vmem:[%s3663_s5 + $0x68] sm:$0x1] }
  0x53   : > { %v410_v52 = vsel %vm3702_vm4, %v405_v15, %v409_v22  ;;  %v2968_v9 = vcombine.low %v1626_v48, %v1629_v58  ;;  %v1633_v10 = vsel %vm3857_vm7, %v2960_v16, %v1632_v53  ;;  %v1634_v41 = vrot.slane %v1632_v53, 4  ;;  %4573 = vst [vmem:[#allocation4_spill] sm:$0xff] %v4005_v60 }
  0x54   : > { %v420_v26 = vsel %vm3702_vm4, %v415_v50, %v419_v47  ;;  %v2961_v22 = vrot.slane %v2953_v2, 9  ;;  %v1641_v40 = vrot.slane %v1639_v24, 4  ;;  %v2962_v43 = vrot.slane %v2954_v6, 9  ;;  %v2955_v47 = vld [vmem:[%s3663_s5 + $0x60] sm:$0xe] }
  0x55   : > { %v2822_v13 = vcombine.low %v410_v52, %v420_v26  ;;  %3272 = vmatmul.mubr.msk.bf16.gmra.mrb[4].mxu0 %vm447_vm3, %v2968_v9  ;;  %v1636_v20 = vsel %vm3857_vm7, %v1634_v41, %v1635_v63  ;;  %v1646_v46 = vrot.slane %v3989_v17, 5  ;;  %v773_v49 = vrot.slane %v3707_v36, 5  ;;  %v739_v2 = vld [vmem:[%s3663_s5 + $0x18] sm:$0xe]  ;;  %v4037_v6 = vld [vmem:[%s4559_s1 + $0x6] sm:$0x3] }
  0x56   : > { %v2969_v33 = vcombine.low %v1633_v10, %v1636_v20  ;;  %v1640_v25 = vsel %vm3857_vm7, %v2961_v22, %v1639_v24  ;;  %v1649_v15 = vrot.slane %v3992_v12, 5  ;;  %v1643_v48 = vsel %vm3857_vm7, %v1641_v40, %v1642_v1  ;;  %v741_v1 = vld [vmem:[%s3663_s5 + $0x30] sm:$0xe] }
  0x57   : > { %3190 = vmatmul.mubr.msk.bf16.gmra.mrb[12].mxu1 %vm447_vm3, %v2822_v13  ;;  %v1647_v51 = vsel %vm3857_vm7, %v2962_v43, %v1646_v46  ;;  %v1648_v16 = vrot.slane %v1646_v46, 4  ;;  %v1653_v50 = vrot.slane %v4002_v35, 5  ;;  %v2832_v53 = vcombine.low %v3698_v31, %v3707_v36  ;;  %v740_v36 = vld [vmem:[%s3663_s5 + $0x24] sm:$0xe]  ;;  %v4311_v12 = vld [vmem:[%s3663_s5 + $0x70] sm:$0xf] }
  0x58   : > { %3195 = vmatprep.mubr.msk.bf16.mxu1 %vm447_vm3, %v2831_v61  ;;  %3275 = vmatprep.mubr.msk.bf16.mxu0 %vm447_vm3, %v2969_v33  ;;  %v2970_v63 = vcombine.low %v1640_v25, %v1643_v48  ;;  %v2963_v52 = vrot.slane %v2955_v47, 9  ;;  %v1656_v58 = vrot.slane %v4005_v60, 5  ;;  %v738_v61 = vld [vmem:[%s3663_s5 + $0xc] sm:$0xe]  ;;  %v776_v26 = vrot.slane %v3717_v44, 5 }
  0x59   : > { %v2833_v9 = vcombine.low %v3746_v21, %v3753_v27  ;;  %v1650_v10 = vsel %vm3857_vm7, %v1648_v16, %v1649_v15  ;;  %v1655_v41 = vrot.slane %v1653_v50, 4  ;;  %v871_v13 = vsel %vm472_vm0, %v3777_v57, 0  ;;  %v3523_v16 = vld [vmem:[%s3663_s5 + $0x18] sm:$0xff]   ;;  %v4283_v60 = vld [vmem:[%s3663_s5 + $0x64] sm:$0xf] }
  0x5a   : > { %v2971_v31 = vcombine.low %v1647_v51, %v1650_v10  ;;  %v2848_v44 = vrot.slane %v738_v61, 9  ;;  %v775_v20 = vrot.slane %v773_v49, 4  ;;  %v2849_v21 = vrot.slane %v739_v2, 9  ;;  %4574 = vst [vmem:[#allocation5_spill] sm:$0xff] %v4283_v60 }
  0x5b   : > { %v1654_v22 = vsel %vm3857_vm7, %v2963_v52, %v1653_v50  ;;  %v1657_v57 = vsel %vm3857_vm7, %v1655_v41, %v1656_v58  ;;  %v780_v24 = vrot.slane %v3753_v27, 5  ;;  %v783_v40 = vrot.slane %v3761_v38, 5 }
  0x5c   : > { %v4050_v33 = vsel %vm3857_vm7, %v2848_v44, %v773_v49  ;;  %v4054_v25 = vsel %vm3857_vm7, %v775_v20, %v776_v26  ;;  %v2850_v43 = vrot.slane %v740_v36, 9  ;;  %v2972_v49 = vcombine.low %v1654_v22, %v1657_v57  ;;  %v3016_v26 = vld [vmem:[%s3663_s5 + $0x18] sm:$0xf]  ;;  %v3525_v57 = vld [vmem:[%s3663_s5 + $0x24] sm:$0xff]  }
  0x5d   : > { %3276 = vmatmul.mubr.msk.bf16.gmra.mrb[8].mxu0 %vm447_vm3, %v2970_v63  ;;  %v2857_v27 = vcombine.low %v4050_v33, %v4054_v25  ;;  %v4063_v46 = vsel %vm3857_vm7, %v2849_v21, %v780_v24  ;;  %v782_v47 = vrot.slane %v780_v24, 4  ;;  %v787_v15 = vrot.slane %v3793_v19, 5 }
  0x5e   : > { %3279 = vmatprep.mubr.msk.bf16.mxu0 %vm447_vm3, %v2971_v31  ;;  %v790_v48 = vrot.slane %v3803_v29, 5  ;;  %v2851_v38 = vrot.slane %v741_v1, 9  ;;  %v2834_v51 = vcombine.low %v3790_v11, %v3793_v19  ;;  %v797_v63 = vrot.slane %v3839_v39, 5  ;;  %v742_v19 = vld [vmem:[%s3663_s5 + $0x3c] sm:$0xe] }
  0x5f   : > { %3196 = vmatmul.mubr.msk.bf16.vlgmr.msra.gmra.mrb[0].mxu1 %vm447_vm3, %v2832_v53  ;;  %v4072_v50 = vsel %vm3857_vm7, %v782_v47, %v783_v40  ;;  %v794_v53 = vrot.slane %v3834_v23, 5  ;;  %v2835_v52 = vcombine.low %v3828_v14, %v3834_v23  ;;  %v4082_v58 = vsel %vm3857_vm7, %v2850_v43, %v787_v15  ;;  %v737_v14 = vld [vmem:[%s3663_s5] sm:$0xe]  ;;  %v4110_v31 = vld [vmem:[%s3663_s5 + $0x1c] sm:$0xf] }
  0x60   : > { %3212 = vmatpush3.bf16.msra.mxu1 %v871_v13  ;;  %3199 = vmatprep.mubr.msk.bf16.mxu1 %vm447_vm3, %v2833_v9  ;;  %v2858_v29 = vcombine.low %v4063_v46, %v4072_v50  ;;  %v789_v11 = vrot.slane %v787_v15, 4  ;;  %v766_v61 = vrot.slane %v3669_v7, 5  ;;  %v2852_v10 = vrot.slane %v742_v19, 9  ;;  %v743_v1 = vld [vmem:[%s3663_s5 + $0x48] sm:$0xe] }
  0x61   : > { %3470 = vmatprep.subr.msk.bf16.mxu1 %vm472_vm0, %v4037_v6  ;;  %v4088_v2 = vsel %vm3857_vm7, %v2851_v38, %v794_v53  ;;  %v796_v39 = vrot.slane %v794_v53, 4  ;;  %v769_v41 = vrot.slane %v3672_v8, 5  ;;  %v2847_v36 = vrot.slane %v737_v14, 9  ;;  %v4136_v38 = vld [vmem:[%s4559_s1 + $0x10] sm:$0x3] }
  0x62   : > { %v4094_v23 = vsel %vm3857_vm7, %v789_v11, %v790_v48  ;;  %v768_v44 = vrot.slane %v766_v61, 4  ;;  %v801_v20 = vrot.slane %v3862_v4, 5  ;;  %v804_v21 = vrot.slane %v3865_v18, 5  ;;  %v4157_v14 = vld [vmem:[%s3663_s5 + $0x28] sm:$0xf] }
  0x63   : > { %v4103_v9 = vsel %vm3857_vm7, %v796_v39, %v797_v63  ;;  %v2836_v22 = vcombine.low %v3851_v56, %v3862_v4  ;;  %v2051_v24 = vshrl.u32 %v3016_v26, 16  ;;  %v2054_v8 = vshll.u32 %v3016_v26, 16  ;;  %v3527_v4 = vld [vmem:[%s3663_s5 + $0x30] sm:$0xff]   ;;  %v4259_v46 = vld [vmem:[%s3663_s5 + $0x44] sm:$0x1] }
  0x64   : > { %v2060_v40 = vshll.u32 %v4110_v31, 16  ;;  %v2064_v43 = vshrl.u32 %v4110_v31, 16  ;;  %v4122_v47 = vsel %vm3857_vm7, %v2852_v10, %v801_v20  ;;  %v2293_v18 = vsel %vm472_vm0, %v3925_v34, 0  ;;  %v3034_v7 = vld [vmem:[%s3663_s5 + $0x60] sm:$0xf] }
  0x65   : > { %3280 = vmatmul.mubr.msk.bf16.gmra.mrb[12].mxu0 %vm447_vm3, %v2972_v49  ;;  %v803_v49 = vrot.slane %v801_v20, 4  ;;  %v2837_v56 = vcombine.low %v3876_v30, %v3892_v62  ;;  %v767_v15 = vsel %vm3857_vm7, %v2847_v36, %v766_v61  ;;  %v770_v48 = vsel %vm3857_vm7, %v768_v44, %v769_v41  ;;  %v4144_v30 = vld [vmem:[%s3663_s5 + $0x20] sm:$0x1]  ;;  %v3019_v61 = vld [vmem:[%s3663_s5 + $0x24] sm:$0xf] }
  0x66   : > { %3285 = vmatprep.mubr.msk.bf16.mxu0 %vm447_vm3, %v3523_v16  ;;  %v2853_v34 = vrot.slane %v743_v1, 9  ;;  %v2053_v16 = vrot.slane %v2051_v24, 4  ;;  %v2056_v53 = vrot.slane %v2054_v8, 5  ;;  %v4150_v11 = vrot.slane %v2060_v40, 5  ;;  %v744_v44 = vld [vmem:[%s3663_s5 + $0x54] sm:$0xe] }
  0x67   : > { %3200 = vmatmul.mubr.msk.bf16.gmra.mrb[4].mxu1 %vm447_vm3, %v2834_v51  ;;  %v4140_v51 = vsel %vm3857_vm7, %v803_v49, %v804_v21  ;;  %v2066_v19 = vrot.slane %v2064_v43, 4  ;;  %v811_v39 = vrot.slane %v3896_v55, 5  ;;  %v2838_v10 = vcombine.low %v3914_v28, %v3930_v37  ;;  %v3022_v55 = vld [vmem:[%s3663_s5 + $0x30] sm:$0xf]  ;;  %v3529_v20 = vld [vmem:[%s3663_s5 + $0x3c] sm:$0xff]   ;;  %v3530_v1 = vld [vmem:[%s3663_s5 + $0x48] sm:$0xff]  }
  0x68   : > { %3203 = vmatprep.mubr.msk.bf16.mxu1 %vm447_vm3, %v2835_v52  ;;  %v808_v52 = vrot.slane %v3892_v62, 5  ;;  %v2856_v41 = vcombine.low %v767_v15, %v770_v48  ;;  %v2070_v36 = vshll.u32 %v4144_v30, 16  ;;  %v2057_v21 = vor.u32 %v2056_v53, %v2053_v16  ;;  %v4176_v8 = vld [vmem:[%s3663_s5 + $0x34] sm:$0xf] }
  0x69   : > { %v2067_v28 = vor.u32 %v2066_v19, %v4150_v11  ;;  %v2084_v40 = vshll.u32 %v4157_v14, 16  ;;  %v2088_v43 = vshrl.u32 %v4157_v14, 16  ;;  %v815_v15 = vrot.slane %v3930_v37, 5 }
  0x6a   : > { %v4161_v62 = vsel %vm3857_vm7, %v2853_v34, %v808_v52  ;;  %v810_v26 = vrot.slane %v808_v52, 4  ;;  %v2108_v48 = vshll.u32 %v4176_v8, 16  ;;  %v2112_v34 = vshrl.u32 %v4176_v8, 16 }
  0x6b   : > { %v818_v16 = vrot.slane %v3939_v54, 5  ;;  %v2058_v53 = vrot.slane %v2057_v21, 4  ;;  %v2072_v52 = vrot.slane %v2070_v36, 5  ;;  %v2068_v37 = vrot.slane %v2067_v28, 4  ;;  %v4199_v36 = vld [vmem:[%s3663_s5 + $0x2c] sm:$0x1] }
  0x6c   : > { %v4173_v24 = vsel %vm3857_vm7, %v810_v26, %v811_v39  ;;  %v4195_v26 = vrot.slane %v2084_v40, 5  ;;  %v4206_v21 = vld [vmem:[%s3663_s5 + $0x38] sm:$0x1]  ;;  %v1073_v28 = vsel %vm472_vm0, %v4037_v6, 0 }
  0x6d   : > { %3286 = vmatmul.mubr.msk.bf16.vlgmr.msra.gmra.mrb[0].mxu0 %vm447_vm3, %v3525_v57  ;;  %v2078_v57 = vshll.u32 %v3019_v61, 16  ;;  %v3531_v40 = vld [vmem:[%s3663_s5 + $0x54] sm:$0xff]  }
  0x6e   : > { %3302 = vmatpush3.bf16.msra.mxu0 %v2293_v18  ;;  %3289 = vmatprep.mubr.msk.bf16.mxu0 %vm447_vm3, %v3527_v4  ;;  %v2099_v18 = vshrl.u32 %v3022_v55, 16  ;;  %v2854_v4 = vrot.slane %v744_v44, 9 }
  0x6f   : > { %3204 = vmatmul.mubr.msk.bf16.gmra.mrb[8].mxu1 %vm447_vm3, %v2836_v22  ;;  %3476 = vmatprep.subr.msk.bf16.mxu0 %vm472_vm0, %v4136_v38  ;;  %v2075_v22 = vshrl.u32 %v3019_v61, 16  ;;  %v817_v61 = vrot.slane %v815_v15, 4  ;;  %v2080_v54 = vrot.slane %v2078_v57, 5  ;;  %v2114_v57 = vrot.slane %v2112_v34, 4  ;;  %v3028_v34 = vld [vmem:[%s3663_s5 + $0x48] sm:$0xf] }
  0x70   : > { %3207 = vmatprep.mubr.msk.bf16.mxu1 %vm447_vm3, %v2837_v56  ;;  %v2102_v56 = vshll.u32 %v3022_v55, 16  ;;  %v4191_v19 = vsel %vm3857_vm7, %v2854_v4, %v815_v15  ;;  %v2090_v55 = vrot.slane %v2088_v43, 4  ;;  %v2101_v44 = vrot.slane %v2099_v18, 4  ;;  %v4217_v43 = vld [vmem:[%s3663_s5 + $0x40] sm:$0xf] }
  0x71   : > { %v2077_v39 = vrot.slane %v2075_v22, 4  ;;  %v4208_v22 = vrot.slane %v2108_v48, 5  ;;  %v3532_v18 = vld [vmem:[%s3663_s5 + $0x60] sm:$0xff]   ;;  %v2073_v4 = vsel %vm3702_vm4, %v2068_v37, %v2072_v52  ;;  %v2094_v48 = vshll.u32 %v4199_v36, 16 }
  0x72   : > { %v2147_v52 = vshrl.u32 %v3028_v34, 16  ;;  %v2150_v37 = vshll.u32 %v3028_v34, 16 }
  0x73   : > { %v2081_v15 = vor.u32 %v2080_v54, %v2077_v39  ;;  %v2115_v63 = vor.u32 %v2114_v57, %v4208_v22  ;;  %v3031_v57 = vld [vmem:[%s3663_s5 + $0x54] sm:$0xf] }
  0x74   : > { %v2149_v50 = vrot.slane %v2147_v52, 4  ;;  %v2174_v34 = vshll.u32 %v3031_v57, 16 }
  0x75   : > { %3290 = vmatmul.mubr.msk.bf16.gmra.mrb[4].mxu0 %vm447_vm3, %v3529_v20  ;;  %v2104_v20 = vrot.slane %v2102_v56, 5  ;;  %v2063_v56 = vsel %vm3702_vm4, %v2058_v53, %v4150_v11  ;;  %v2132_v11 = vshll.u32 %v4217_v43, 16  ;;  %v2136_v53 = vshrl.u32 %v4217_v43, 16 }
  0x76   : > { %3293 = vmatprep.mubr.msk.bf16.mxu0 %vm447_vm3, %v3530_v1  ;;  %v2118_v1 = vshll.u32 %v4206_v21, 16  ;;  %v3041_v54 = vcombine.low %v2063_v56, %v2073_v4  ;;  %v2116_v56 = vrot.slane %v2115_v63, 4  ;;  %v4264_v63 = vld [vmem:[%s3663_s5 + $0x50] sm:$0x1] }
  0x77   : > { %3208 = vmatmul.mubr.msk.bf16.gmra.mrb[12].mxu1 %vm447_vm3, %v2838_v10  ;;  %v4203_v10 = vsel %vm3857_vm7, %v817_v61, %v818_v16  ;;  %v4228_v16 = vld [vmem:[%s3663_s5 + $0x4c] sm:$0xf]  ;;  %v2091_v61 = vor.u32 %v2090_v55, %v4195_v26  ;;  %v2105_v6 = vor.u32 %v2104_v20, %v2101_v44  ;;  %v2082_v55 = vrot.slane %v2081_v15, 4 }
  0x78   : > { %3213 = vmatprep.mubr.msk.bf16.mxu1 %vm447_vm3, %v2856_v41  ;;  %v3025_v41 = vld [vmem:[%s3663_s5 + $0x3c] sm:$0xf]  ;;  %v2156_v39 = vshll.u32 %v4228_v16, 16  ;;  %v2096_v44 = vrot.slane %v2094_v48, 5  ;;  %v2160_v20 = vshrl.u32 %v4228_v16, 16  ;;  %v2120_v33 = vrot.slane %v2118_v1, 5 }
  0x79   : > { %v2123_v49 = vshrl.u32 %v3025_v41, 16  ;;  %v2126_v13 = vshll.u32 %v3025_v41, 16  ;;  %v2092_v41 = vrot.slane %v2091_v61, 4  ;;  %v4252_v15 = vrot.slane %v2132_v11, 5 }
  0x7a   : > { %v2138_v48 = vrot.slane %v2136_v53, 4  ;;  %v2171_v1 = vshrl.u32 %v3031_v57, 16  ;;  %v1342_v11 = vshll.u32 %v3978_v59, 16  ;;  %v2087_v53 = vsel %vm3702_vm4, %v2082_v55, %v4195_v26 }
  0x7b   : > { %v2125_v25 = vrot.slane %v2123_v49, 4  ;;  %v2128_v4 = vrot.slane %v2126_v13, 5  ;;  %v4261_v49 = vrot.slane %v2156_v39, 5  ;;  %v2162_v13 = vrot.slane %v2160_v20, 4 }
  0x7c   : > { %v2097_v52 = vsel %vm3702_vm4, %v2092_v41, %v2096_v44  ;;  %v2139_v57 = vor.u32 %v2138_v48, %v4252_v15  ;;  %v2121_v26 = vsel %vm3702_vm4, %v2116_v56, %v2120_v33  ;;  %v2173_v44 = vrot.slane %v2171_v1, 4  ;;  %v4302_v56 = vld [vmem:[%s3663_s5 + $0x5c] sm:$0x1] }
  0x7d   : > { %3294 = vmatmul.mubr.msk.bf16.gmra.mrb[8].mxu0 %vm447_vm3, %v3531_v40  ;;  %v2106_v40 = vrot.slane %v2105_v6, 4  ;;  %v2129_v20 = vor.u32 %v2128_v4, %v2125_v25  ;;  %v2163_v41 = vor.u32 %v2162_v13, %v4261_v49  ;;  %v4576_v33 = vcombine.low %v4088_v2, %v4103_v9 }
  0x7e   : > { %3297 = vmatprep.mubr.msk.bf16.mxu0 %vm447_vm3, %v3532_v18  ;;  %v3533_v18 = vld [vmem:[%s3663_s5 + $0x6c] sm:$0xff]   ;;  %v2195_v4 = vshrl.u32 %v3034_v7, 16  ;;  %v1346_v48 = vshrl.u32 %v3978_v59, 16  ;;  %v3042_v13 = vcombine.low %v2087_v53, %v2097_v52 }
  0x7f   : > { %3214 = vmatmul.mubr.msk.bf16.vlgmr.msra.gmra.mrb[0].mxu1 %vm447_vm3, %v2857_v27  ;;  %v4249_v27 = vld [vmem:[%s3663_s5 + $0x58] sm:$0xf]  ;;  %v2111_v39 = vsel %vm3702_vm4, %v2106_v40, %v4208_v22  ;;  %v4575_v22 = vcombine.low %v4082_v58, %v4094_v23  ;;  %v2176_v40 = vrot.slane %v2174_v34, 5  ;;  %v2198_v58 = vshll.u32 %v3034_v7, 16 }
  0x80   : > { %3230 = vmatpush3.bf16.msra.mxu1 %v1073_v28  ;;  %3217 = vmatprep.mubr.msk.bf16.mxu1 %vm447_vm3, %v2858_v29  ;;  %v3542_v28 = vld [vmem:[%s4559_s1 + $0x8] sm:$0x3]  ;;  %v2152_v29 = vrot.slane %v2150_v37, 5  ;;  %v2180_v61 = vshll.u32 %v4249_v27, 16  ;;  %v2184_v6 = vshrl.u32 %v4249_v27, 16  ;;  %v2547_v37 = vsel %vm472_vm0, %v4136_v38, 0 }
  0x81   : > { %3472 = vmatprep.subr.msk.bf16.mxu1 %vm472_vm0, %v3542_v28  ;;  %v2142_v28 = vshll.u32 %v4259_v46, 16  ;;  %v2166_v38 = vshll.u32 %v4264_v63, 16  ;;  %v2204_v23 = vshll.u32 %v4283_v60, 16  ;;  %v3043_v34 = vcombine.low %v2111_v39, %v2121_v26 }
  0x82   : > { %v2153_v55 = vor.u32 %v2152_v29, %v2149_v50  ;;  %v4295_v25 = vrot.slane %v2180_v61, 5  ;;  %v2130_v50 = vrot.slane %v2129_v20, 4  ;;  %v2140_v29 = vrot.slane %v2139_v57, 4 }
  0x83   : > { %v2144_v1 = vrot.slane %v2142_v28, 5  ;;  %v2168_v9 = vrot.slane %v2166_v38, 5  ;;  %v2164_v61 = vrot.slane %v2163_v41, 4  ;;  %v2190_v7 = vshll.u32 %v4302_v56, 16  ;;  %v4323_v28 = vld [vmem:[%s3663_s5 + $0x68] sm:$0x1] }
  0x84   : > { %v2154_v2 = vrot.slane %v2153_v55, 4  ;;  %v2197_v35 = vrot.slane %v2195_v4, 4  ;;  %v4313_v59 = vrot.slane %v2204_v23, 5  ;;  %v4315_v57 = vrot.slane %v1342_v11, 5 }
  0x85   : > { %3298 = vmatmul.mubr.msk.bf16.gmra.mrb[12].mxu0 %vm447_vm3, %v3533_v18  ;;  %v2186_v18 = vrot.slane %v2184_v6, 4  ;;  %v2177_v6 = vor.u32 %v2176_v40, %v2173_v44  ;;  %v1348_v53 = vrot.slane %v1346_v48, 4  ;;  %v2135_v52 = vsel %vm3702_vm4, %v2130_v50, %v4252_v15 }
  0x86   : > { %3303 = vmatprep.mubr.msk.bf16.mxu0 %vm447_vm3, %v3041_v54  ;;  %v2208_v54 = vshrl.u32 %v4283_v60, 16  ;;  %v2200_v60 = vrot.slane %v2198_v58, 5  ;;  %v2145_v39 = vsel %vm3702_vm4, %v2140_v29, %v2144_v1  ;;  %v2228_v38 = vshll.u32 %v4311_v12, 16  ;;  %v3534_v1 = vld [vmem:[%s3663_s5 + $0xc] sm:$0xff]  }
  0x87   : > { %3218 = vmatmul.mubr.msk.bf16.gmra.mrb[4].mxu1 %vm447_vm3, %v4575_v22  ;;  %v2187_v22 = vor.u32 %v2186_v18, %v4295_v25  ;;  %v2232_v44 = vshrl.u32 %v4311_v12, 16  ;;  %v4577_v11 = vcombine.low %v4122_v47, %v4140_v51  ;;  %v2159_v15 = vsel %vm3702_vm4, %v2154_v2, %v4261_v49 }
  0x88   : > { %3221 = vmatprep.mubr.msk.bf16.mxu1 %vm447_vm3, %v4576_v33  ;;  %v3037_v33 = vld [vmem:[%s3663_s5 + $0x6c] sm:$0xf]  ;;  %v2210_v20 = vrot.slane %v2208_v54, 4  ;;  %v2169_v41 = vsel %vm3702_vm4, %v2164_v61, %v2168_v9  ;;  %v2178_v40 = vrot.slane %v2177_v6, 4  ;;  %v2192_v18 = vrot.slane %v2190_v7, 5 }
  0x89   : > { %v2219_v26 = vshrl.u32 %v3037_v33, 16  ;;  %v2222_v55 = vshll.u32 %v3037_v33, 16  ;;  %v4578_v4 = vcombine.low %v4161_v62, %v4173_v24  ;;  %v2188_v47 = vrot.slane %v2187_v22, 4  ;;  %v2922_v22 = vld [vmem:[%s3663_s5 + $0x48] sm:$0xf] }
  0x8a   : > { %v2201_v51 = vor.u32 %v2200_v60, %v2197_v35  ;;  %v2214_v49 = vshll.u32 %v4323_v28, 16  ;;  %v1349_v58 = vor.u32 %v1348_v53, %v4315_v57  ;;  %v1352_v23 = vshll.u32 %v3981_v0, 16  ;;  %v4352_v60 = vld [vmem:[%s3663_s5 + $0x74] sm:$0x1] }
  0x8b   : > { %v3044_v54 = vcombine.low %v2135_v52, %v2145_v39  ;;  %v2221_v48 = vrot.slane %v2219_v26, 4  ;;  %v2224_v62 = vrot.slane %v2222_v55, 5  ;;  %v4346_v24 = vrot.slane %v2228_v38, 5 }
  0x8c   : > { %v2234_v50 = vrot.slane %v2232_v44, 4  ;;  %v3045_v29 = vcombine.low %v2159_v15, %v2169_v41  ;;  %v2183_v35 = vsel %vm3702_vm4, %v2178_v40, %v4295_v25  ;;  %v2202_v0 = vrot.slane %v2201_v51, 4  ;;  %v3536_v51 = vld [vmem:[%s3663_s5 + $0x24] sm:$0xff]  }
  0x8d   : > { %3304 = vmatmul.mubr.msk.bf16.vlgmr.msra.gmra.mrb[0].mxu0 %vm447_vm3, %v3042_v13  ;;  %v2193_v13 = vsel %vm3702_vm4, %v2188_v47, %v2192_v18  ;;  %v2216_v2 = vrot.slane %v2214_v49, 5  ;;  %v1350_v9 = vrot.slane %v1349_v58, 4  ;;  %v1354_v61 = vrot.slane %v1352_v23, 5 }
  0x8e   : > { %3320 = vmatpush3.bf16.msra.mxu0 %v2547_v37  ;;  %3307 = vmatprep.mubr.msk.bf16.mxu0 %vm447_vm3, %v3043_v34  ;;  %v2211_v37 = vor.u32 %v2210_v20, %v4313_v59  ;;  %v2442_v6 = vrot.slane %v4110_v31, 5  ;;  %v2225_v7 = vor.u32 %v2224_v62, %v2221_v48  ;;  %v2235_v33 = vor.u32 %v2234_v50, %v4346_v24  ;;  %v3057_v20 = vld [vmem:[%s3663_s5 + $0x18] sm:$0xe]  ;;  %v3059_v62 = vld [vmem:[%s3663_s5 + $0x30] sm:$0xe] }
  0x8f   : > { %3222 = vmatmul.mubr.msk.bf16.gmra.mrb[8].mxu1 %vm447_vm3, %v4577_v11  ;;  %v2238_v25 = vshll.u32 %v4352_v60, 16  ;;  %v4579_v53 = vcombine.low %v4191_v19, %v4203_v10  ;;  %v3046_v52 = vcombine.low %v2183_v35, %v2193_v13  ;;  %v2207_v31 = vsel %vm3702_vm4, %v2202_v0, %v4313_v59  ;;  %v3535_v59 = vld [vmem:[%s3663_s5 + $0x18] sm:$0xff]  }
  0x90   : > { %3225 = vmatprep.mubr.msk.bf16.mxu1 %vm447_vm3, %v4578_v4  ;;  %v2212_v34 = vrot.slane %v2211_v37, 4  ;;  %v1333_v26 = vshrl.u32 %v2922_v22, 16  ;;  %v1336_v55 = vshll.u32 %v2922_v22, 16  ;;  %v3065_v19 = vrot.slane %v3057_v20, 9  ;;  %v2919_v4 = vld [vmem:[%s3663_s5 + $0x3c] sm:$0xf] }
  0x91   : > { %v2444_v10 = vrot.slane %v2442_v6, 4  ;;  %v2445_v38 = vrot.slane %v4144_v30, 5  ;;  %v1355_v44 = vsel %vm3702_vm4, %v1350_v9, %v1354_v61  ;;  %v2226_v11 = vrot.slane %v2225_v7, 4  ;;  %v3058_v30 = vld [vmem:[%s3663_s5 + $0x24] sm:$0xe]  ;;  %v3537_v22 = vld [vmem:[%s3663_s5 + $0x30] sm:$0xff]  }
  0x92   : > { %v2217_v39 = vsel %vm3702_vm4, %v2212_v34, %v2216_v2  ;;  %v2236_v15 = vrot.slane %v2235_v33, 4  ;;  %v2240_v41 = vrot.slane %v2238_v25, 5  ;;  %v1335_v40 = vrot.slane %v1333_v26, 4  ;;  %v3538_v20 = vld [vmem:[%s3663_s5 + $0x3c] sm:$0xff]   ;;  %v2925_v26 = vld [vmem:[%s3663_s5 + $0x54] sm:$0xf] }
  0x93   : > { %v3047_v18 = vcombine.low %v2207_v31, %v2217_v39  ;;  %v1338_v47 = vrot.slane %v1336_v55, 5  ;;  %v2443_v37 = vsel %vm3857_vm7, %v3065_v19, %v2442_v6  ;;  %v2446_v49 = vsel %vm3857_vm7, %v2444_v10, %v2445_v38  ;;  %v3061_v38 = vld [vmem:[%s3663_s5 + $0x48] sm:$0xe] }
  0x94   : > { %v2449_v58 = vrot.slane %v4157_v14, 5  ;;  %v2241_v48 = vsel %vm3702_vm4, %v2236_v15, %v2240_v41  ;;  %v2456_v50 = vrot.slane %v4176_v8, 5  ;;  %v1312_v35 = vshll.u32 %v2919_v4, 16 }
  0x95   : > { %3308 = vmatmul.mubr.msk.bf16.gmra.mrb[4].mxu0 %vm447_vm3, %v3044_v54  ;;  %v1339_v23 = vor.u32 %v1338_v47, %v1335_v40  ;;  %v2231_v54 = vsel %vm3702_vm4, %v2226_v11, %v4346_v24  ;;  %v1318_v14 = vshll.u32 %v3960_v42, 16  ;;  %v3066_v24 = vrot.slane %v3058_v30, 9 }
  0x96   : > { %3311 = vmatprep.mubr.msk.bf16.mxu0 %vm447_vm3, %v3045_v29  ;;  %v1309_v29 = vshrl.u32 %v2919_v4, 16  ;;  %v2452_v8 = vrot.slane %v4199_v36, 5  ;;  %v3074_v0 = vcombine.low %v2443_v37, %v2446_v49  ;;  %v2451_v34 = vrot.slane %v2449_v58, 4  ;;  %v3539_v37 = vld [vmem:[%s3663_s5 + $0x48] sm:$0xff]  }
  0x97   : > { %3226 = vmatmul.mubr.msk.bf16.gmra.mrb[12].mxu1 %vm447_vm3, %v4579_v53  ;;  %v1340_v13 = vrot.slane %v1339_v23, 4  ;;  %v3067_v2 = vrot.slane %v3059_v62, 9  ;;  %v3048_v61 = vcombine.low %v2231_v54, %v2241_v48  ;;  %v2458_v6 = vrot.slane %v2456_v50, 4  ;;  %v3540_v23 = vld [vmem:[%s3663_s5 + $0x54] sm:$0xff]  }
  0x98   : > { %3231 = vmatprep.mubr.msk.bf16.mxu1 %vm447_vm3, %v3534_v1  ;;  %v1322_v1 = vshrl.u32 %v3960_v42, 16  ;;  %v2459_v42 = vrot.slane %v4206_v21, 5  ;;  %v1311_v7 = vrot.slane %v1309_v29, 4  ;;  %v1314_v33 = vrot.slane %v1312_v35, 5 }
  0x99   : > { %v1345_v9 = vsel %vm3702_vm4, %v1340_v13, %v4315_v57  ;;  %v4408_v25 = vrot.slane %v1318_v14, 5  ;;  %v2450_v53 = vsel %vm3857_vm7, %v3066_v24, %v2449_v58  ;;  %v2453_v57 = vsel %vm3857_vm7, %v2451_v34, %v2452_v8  ;;  %v3062_v24 = vld [vmem:[%s3663_s5 + $0x54] sm:$0xe]  ;;  %v4580_v8 = vld [vmem:[#allocation5_spill] sm:$0xff] }
  0x9a   : > { %v1324_v36 = vrot.slane %v1322_v1, 4  ;;  %v2457_v21 = vsel %vm3857_vm7, %v3067_v2, %v2456_v50  ;;  %v2463_v31 = vrot.slane %v4217_v43, 5  ;;  %v1328_v39 = vshll.u32 %v3963_v45, 16  ;;  %v2928_v50 = vld [vmem:[%s3663_s5 + $0x60] sm:$0xf] }
  0x9b   : > { %v2460_v55 = vsel %vm3857_vm7, %v2458_v6, %v2459_v42  ;;  %v1315_v19 = vor.u32 %v1314_v33, %v1311_v7  ;;  %v3075_v43 = vcombine.low %v2450_v53, %v2453_v57  ;;  %v2466_v11 = vrot.slane %v4259_v46, 5  ;;  %v4582_v33 = vld [vmem:[#allocation2_spill] sm:$0xff] }
  0x9c   : > { %v1325_v10 = vor.u32 %v1324_v36, %v4408_v25  ;;  %v1357_v15 = vshrl.u32 %v2925_v26, 16  ;;  %v1360_v41 = vshll.u32 %v2925_v26, 16  ;;  %v1366_v40 = vshll.u32 %v3989_v17, 16 }
  0x9d   : > { %3312 = vmatmul.mubr.msk.bf16.gmra.mrb[8].mxu0 %vm447_vm3, %v3046_v52  ;;  %v3060_v52 = vld [vmem:[%s3663_s5 + $0x3c] sm:$0xe]  ;;  %v2465_v4 = vrot.slane %v2463_v31, 4  ;;  %v1330_v47 = vrot.slane %v1328_v39, 5  ;;  %v2473_v58 = vrot.slane %v4264_v63, 5  ;;  %v2477_v63 = vrot.slane %v4249_v27, 5 }
  0x9e   : > { %3315 = vmatprep.mubr.msk.bf16.mxu0 %vm447_vm3, %v3047_v18  ;;  %v3068_v45 = vrot.slane %v3060_v52, 9  ;;  %v3076_v18 = vcombine.low %v2457_v21, %v2460_v55  ;;  %v1326_v49 = vrot.slane %v1325_v10, 4  ;;  %v1359_v46 = vrot.slane %v1357_v15, 4  ;;  %v3063_v27 = vld [vmem:[%s3663_s5 + $0x60] sm:$0xe] }
  0x9f   : > { %3232 = vmatmul.mubr.msk.bf16.vlgmr.msra.gmra.mrb[0].mxu1 %vm447_vm3, %v3535_v59  ;;  %v1370_v59 = vshrl.u32 %v3989_v17, 16  ;;  %v1362_v54 = vrot.slane %v1360_v41, 5  ;;  %v1368_v48 = vrot.slane %v1366_v40, 5  ;;  %v2467_v29 = vsel %vm3857_vm7, %v2465_v4, %v2466_v11  ;;  %v3541_v52 = vld [vmem:[%s3663_s5 + $0x60] sm:$0xff]  }
  0xa0   : > { %3338 = vmatpush3.bf16.msra.mxu1 %v3645_v3  ;;  %3235 = vmatprep.mubr.msk.bf16.mxu1 %vm447_vm3, %v3536_v51  ;;  %v4405_v3 = vcombine.low %v1345_v9, %v1355_v44  ;;  %v2470_v44 = vrot.slane %v4228_v16, 5  ;;  %v3069_v51 = vrot.slane %v3061_v38, 9  ;;  %v1316_v16 = vrot.slane %v1315_v19, 4  ;;  %v4581_v9 = vld [vmem:[#allocation3_spill] sm:$0xff] }
  0xa1   : > { %v1372_v62 = vrot.slane %v1370_v59, 4  ;;  %v2464_v17 = vsel %vm3857_vm7, %v3068_v45, %v2463_v31  ;;  %v1331_v1 = vsel %vm3702_vm4, %v1326_v49, %v1330_v47  ;;  %v1381_v34 = vshrl.u32 %v2928_v50, 16  ;;  %v3064_v47 = vld [vmem:[%s3663_s5 + $0x6c] sm:$0xe] }
  0xa2   : > { %v2472_v30 = vrot.slane %v2470_v44, 4  ;;  %v2471_v35 = vsel %vm3857_vm7, %v3069_v51, %v2470_v44  ;;  %v1321_v14 = vsel %vm3702_vm4, %v1316_v16, %v4408_v25  ;;  %v1384_v2 = vshll.u32 %v2928_v50, 16 }
  0xa3   : > { %v1394_v6 = vshrl.u32 %v4581_v9, 16  ;;  %v3077_v42 = vcombine.low %v2464_v17, %v2467_v29  ;;  %v1373_v7 = vor.u32 %v1372_v62, %v1368_v48  ;;  %v1376_v25 = vshll.u32 %v4582_v33, 16 }
  0xa4   : > { %v2474_v13 = vsel %vm3857_vm7, %v2472_v30, %v2473_v58  ;;  %v2479_v53 = vrot.slane %v2477_v63, 4  ;;  %v2480_v57 = vrot.slane %v4302_v56, 5  ;;  %v2936_v21 = vcombine.low %v1321_v14, %v1331_v1 }
  0xa5   : > { %3316 = vmatmul.mubr.msk.bf16.gmra.mrb[12].mxu0 %vm447_vm3, %v3048_v61  ;;  %v1390_v61 = vshll.u32 %v4581_v9, 16  ;;  %v3078_v36 = vcombine.low %v2471_v35, %v2474_v13  ;;  %v3071_v31 = vrot.slane %v3063_v27, 9  ;;  %v2487_v26 = vrot.slane %v4323_v28, 5 }
  0xa6   : > { %3321 = vmatprep.mubr.msk.bf16.mxu0 %vm447_vm3, %v3074_v0  ;;  %v2484_v0 = vrot.slane %v4580_v8, 5  ;;  %v1383_v55 = vrot.slane %v1381_v34, 4  ;;  %v1386_v19 = vrot.slane %v1384_v2, 5  ;;  %v1396_v38 = vrot.slane %v1394_v6, 4 }
  0xa7   : > { %3236 = vmatmul.mubr.msk.bf16.gmra.mrb[4].mxu1 %vm447_vm3, %v3537_v22  ;;  %v1363_v22 = vor.u32 %v1362_v54, %v1359_v46  ;;  %v1392_v10 = vrot.slane %v1390_v61, 5  ;;  %v1378_v45 = vrot.slane %v1376_v25, 5  ;;  %v2481_v28 = vsel %vm3857_vm7, %v2479_v53, %v2480_v57 }
  0xa8   : > { %3239 = vmatprep.mubr.msk.bf16.mxu1 %vm447_vm3, %v3538_v20  ;;  %v3070_v20 = vrot.slane %v3062_v24, 9  ;;  %v2486_v39 = vrot.slane %v2484_v0, 4  ;;  %v2485_v11 = vsel %vm3857_vm7, %v3071_v31, %v2484_v0  ;;  %v2491_v15 = vrot.slane %v4311_v12, 5  ;;  %v4504_v0 = vld [vmem:[%s4560_s2] ss:$0 sm:$0xff] }
  0xa9   : > { %v1364_v44 = vrot.slane %v1363_v22, 4  ;;  %v1387_v40 = vor.u32 %v1386_v19, %v1383_v55  ;;  %v1397_v59 = vor.u32 %v1396_v38, %v1392_v10  ;;  %v3072_v30 = vrot.slane %v3064_v47, 9 }
  0xaa   : > { %v2478_v56 = vsel %vm3857_vm7, %v3070_v20, %v2477_v63  ;;  %v2488_v41 = vsel %vm3857_vm7, %v2486_v39, %v2487_v26  ;;  %v2493_v12 = vrot.slane %v2491_v15, 4  ;;  %v2494_v58 = vrot.slane %v4352_v60, 5 }
  0xab   : > { %v1369_v51 = vsel %vm3702_vm4, %v1364_v44, %v1368_v48  ;;  %v3079_v16 = vcombine.low %v2478_v56, %v2481_v28  ;;  %v3080_v49 = vcombine.low %v2485_v11, %v2488_v41  ;;  %v1388_v46 = vrot.slane %v1387_v40, 4 }
  0xac   : > { %v1398_v54 = vrot.slane %v1397_v59, 4  ;;  %v2492_v48 = vsel %vm3857_vm7, %v3072_v30, %v2491_v15  ;;  %v2495_v50 = vsel %vm3857_vm7, %v2493_v12, %v2494_v58 }
  0xad   : > { %3322 = vmatmul.mubr.msk.bf16.vlgmr.msra.gmra.mrb[0].mxu0 %vm447_vm3, %v3075_v43  ;;  %v1374_v43 = vrot.slane %v1373_v7, 4  ;;  %v1393_v60 = vsel %vm3702_vm4, %v1388_v46, %v1392_v10  ;;  %v3081_v29 = vcombine.low %v2492_v48, %v2495_v50 }
  0xae   : > { %3325 = vmatprep.mubr.msk.bf16.mxu0 %vm447_vm3, %v3076_v18  ;;  %v4583_v18 = vld [vmem:[#allocation4_spill] sm:$0xff] }
  0xaf   : > { %3240 = vmatmul.mubr.msk.bf16.gmra.mrb[8].mxu1 %vm447_vm3, %v3539_v37  ;;  %v1400_v4 = vshll.u32 %v4583_v18, 16  ;;  %v1379_v37 = vsel %vm3702_vm4, %v1374_v43, %v1378_v45 }
  0xb0   : > { %3243 = vmatprep.mubr.msk.bf16.mxu1 %vm447_vm3, %v3540_v23  ;;  %v2938_v23 = vcombine.low %v1369_v51, %v1379_v37 }
  0xb1   : > { %v1402_v62 = vrot.slane %v1400_v4, 5 }
  0xb3   : > { %v1403_v17 = vsel %vm3702_vm4, %v1398_v54, %v1402_v62 }
  0xb4   : > { %v2939_v35 = vcombine.low %v1393_v60, %v1403_v17 }
  0xb5   : > { %3326 = vmatmul.mubr.msk.bf16.gmra.mrb[4].mxu0 %vm447_vm3, %v3077_v42 }
  0xb6   : > { %3329 = vmatprep.mubr.msk.bf16.mxu0 %vm447_vm3, %v3078_v36 }
  0xb7   : > { %3244 = vmatmul.mubr.msk.bf16.gmra.mrb[12].mxu1 %vm447_vm3, %v3541_v52 }
  0xb8   : > { %3257 = vmatprep.mubr.msk.bf16.mxu1 %vm447_vm3, %v2936_v21 }
  0xbd   : > { %3330 = vmatmul.mubr.msk.bf16.gmra.mrb[8].mxu0 %vm447_vm3, %v3079_v16 }
  0xbe   : > { %3333 = vmatprep.mubr.msk.bf16.mxu0 %vm447_vm3, %v3080_v49 }
  0xbf   : > { %3258 = vmatmul.mubr.msk.bf16.vlgmr.msra.gmra.mrb[8].mxu1 %vm447_vm3, %v4405_v3 }
  0xc0   : > { %3261 = vmatprep.mubr.msk.bf16.mxu1 %vm447_vm3, %v2938_v23 }
  0xc5   : > { %3334 = vmatmul.mubr.msk.bf16.gmra.mrb[12].mxu0 %vm447_vm3, %v3081_v29 }
  0xc7   : > { %3262 = vmatmul.mubr.msk.bf16.gmra.mrb[12].mxu1 %vm447_vm3, %v2939_v35 }
 0x172   : > { %v3233_v3 = vpop.f32.mrb[0].mxu1 }
 0x173   : > { %v1109_v5 = vpop.f32.mrb[1].mxu1 }
 0x174   : > { %v3234_v63 = vpop.f32.mrb[2].mxu1 }
 0x175   : > { %v1112_v14 = vpop.f32.mrb[3].mxu1 }
 0x17a   : > { %v3237_v1 = vpop.f32.mrb[4].mxu1 }
 0x17b   : > { %v1125_v13 = vpop.f32.mrb[5].mxu1 }
 0x17c   : > { %v3238_v24 = vpop.f32.mrb[6].mxu1 }
 0x17d   : > { %v1128_v32 = vpop.f32.mrb[7].mxu1 }
 0x180   : > { %v3323_v8 = vpop.f32.mrb[0].mxu0 }
 0x181   : > { %v3339_v27 = vadd.f32 %v3323_v8, %v3233_v3  ;;  %v2583_v34 = vpop.f32.mrb[1].mxu0 }
 0x182   : > { %v3340_v2 = vadd.f32 %v2583_v34, %v1109_v5  ;;  %v3324_v9 = vpop.f32.mrb[2].mxu0 }
 0x183   : > { %v2671_v61 = vadd.f32 %v3339_v27, %v4504_v0  ;;  %v3341_v6 = vadd.f32 %v3324_v9, %v3234_v63  ;;  %v2586_v42 = vpop.f32.mrb[3].mxu0 }
 0x184   : > { %v2669_v22 = vadd.f32 %v3340_v2, %v4504_v0  ;;  %v3342_v7 = vadd.f32 %v2586_v42, %v1112_v14 }
 0x185   : > { %2687 = vst [vmem:[%s4509_s6 + $0x10] sm:$0xff] %v2671_v61  ;;  %v2672_v33 = vadd.f32 %v3341_v6, %v4504_v0 }
 0x186   : > { %2685 = vst [vmem:[%s4509_s6] sm:$0xff] %v2669_v22  ;;  %v2670_v25 = vadd.f32 %v3342_v7, %v4504_v0 }
 0x187   : > { %2688 = vst [vmem:[%s4509_s6 + $0x18] sm:$0xff] %v2672_v33 }
 0x188   : > { %2686 = vst [vmem:[%s4509_s6 + $0x8] sm:$0xff] %v2670_v25  ;;  %v3327_v36 = vpop.f32.mrb[4].mxu0 }
 0x189   : > { %v3343_v20 = vadd.f32 %v3327_v36, %v3237_v1  ;;  %v2599_v53 = vpop.f32.mrb[5].mxu0 }
 0x18a   : > { %v3344_v57 = vadd.f32 %v2599_v53, %v1125_v13  ;;  %v3328_v52 = vpop.f32.mrb[6].mxu0 }
 0x18b   : > { %v2675_v21 = vadd.f32 %v3343_v20, %v4504_v0  ;;  %v3345_v31 = vadd.f32 %v3328_v52, %v3238_v24  ;;  %v2602_v39 = vpop.f32.mrb[7].mxu0 }
 0x18c   : > { %v2673_v26 = vadd.f32 %v3344_v57, %v4504_v0  ;;  %v3346_v55 = vadd.f32 %v2602_v39, %v1128_v32 }
 0x18d   : > { %2691 = vst [vmem:[%s4509_s6 + $0x30] sm:$0xff] %v2675_v21  ;;  %v2676_v19 = vadd.f32 %v3345_v31, %v4504_v0 }
 0x18e   : > { %2689 = vst [vmem:[%s4509_s6 + $0x20] sm:$0xff] %v2673_v26  ;;  %v2674_v10 = vadd.f32 %v3346_v55, %v4504_v0 }
 0x18f   : > { %2692 = vst [vmem:[%s4509_s6 + $0x38] sm:$0xff] %v2676_v19 }
 0x190   : > { %2690 = vst [vmem:[%s4509_s6 + $0x28] sm:$0xff] %v2674_v10  ;;  %v3331_v38 = vpop.f32.mrb[8].mxu0 }
 0x191   : > { %v2615_v43 = vpop.f32.mrb[9].mxu0 }
 0x192   : > { %v3259_v44 = vpop.f32.mrb[8].mxu1  ;;  %v3332_v28 = vpop.f32.mrb[10].mxu0 }
 0x193   : > { %v3347_v45 = vadd.f32 %v3331_v38, %v3259_v44  ;;  %v1523_v56 = vpop.f32.mrb[9].mxu1  ;;  %v2618_v41 = vpop.f32.mrb[11].mxu0 }
 0x194   : > { %v3348_v11 = vadd.f32 %v2615_v43, %v1523_v56  ;;  %v3260_v15 = vpop.f32.mrb[10].mxu1 }
 0x195   : > { %v2679_v40 = vadd.f32 %v3347_v45, %v4504_v0  ;;  %v3349_v59 = vadd.f32 %v3332_v28, %v3260_v15  ;;  %v1526_v18 = vpop.f32.mrb[11].mxu1 }
 0x196   : > { %v2677_v4 = vadd.f32 %v3348_v11, %v4504_v0  ;;  %v3350_v47 = vadd.f32 %v2618_v41, %v1526_v18 }
 0x197   : > { %2695 = vst [vmem:[%s4509_s6 + $0x50] sm:$0xff] %v2679_v40  ;;  %v2680_v51 = vadd.f32 %v3349_v59, %v4504_v0 }
 0x198   : > { %2693 = vst [vmem:[%s4509_s6 + $0x40] sm:$0xff] %v2677_v4  ;;  %v2678_v37 = vadd.f32 %v3350_v47, %v4504_v0  ;;  %v3335_v16 = vpop.f32.mrb[12].mxu0 }
 0x199   : > { %2696 = vst [vmem:[%s4509_s6 + $0x58] sm:$0xff] %v2680_v51  ;;  %v2631_v30 = vpop.f32.mrb[13].mxu0 }
 0x19a   : > { %2694 = vst [vmem:[%s4509_s6 + $0x48] sm:$0xff] %v2678_v37  ;;  %v3263_v49 = vpop.f32.mrb[12].mxu1  ;;  %v3336_v23 = vpop.f32.mrb[14].mxu0 }
 0x19b   : > { %v3351_v12 = vadd.f32 %v3335_v16, %v3263_v49  ;;  %v1539_v58 = vpop.f32.mrb[13].mxu1  ;;  %v2634_v62 = vpop.f32.mrb[15].mxu0 }
 0x19c   : > { %v3352_v46 = vadd.f32 %v2631_v30, %v1539_v58  ;;  %v3264_v54 = vpop.f32.mrb[14].mxu1 }
 0x19d   : > { %v2683_v48 = vadd.f32 %v3351_v12, %v4504_v0  ;;  %v3353_v50 = vadd.f32 %v3336_v23, %v3264_v54  ;;  %v1542_v60 = vpop.f32.mrb[15].mxu1 }
 0x19e   : > { %v2681_v17 = vadd.f32 %v3352_v46, %v4504_v0  ;;  %v3354_v29 = vadd.f32 %v2634_v62, %v1542_v60 }
 0x19f   : > { %2699 = vst [vmem:[%s4509_s6 + $0x70] sm:$0xff] %v2683_v48  ;;  %v2684_v35 = vadd.f32 %v3353_v50, %v4504_v0 }
 0x1a0   : > { %2697 = vst [vmem:[%s4509_s6 + $0x60] sm:$0xff] %v2681_v17  ;;  %v2682_v3 = vadd.f32 %v3354_v29, %v4504_v0 }
 0x1a1   : > { %2700 = vst [vmem:[%s4509_s6 + $0x78] sm:$0xff] %v2684_v35 }
 0x1a2   : > { %2698 = vst [vmem:[%s4509_s6 + $0x68] sm:$0xff] %v2682_v3 }
 0x1a3 PF: > { %s13_s16 = sadd.s32 1, %s3581_s16   ;;  %s4584_s12 = smov %s3573_s14 }
 0x1a4   : > { %p10_p7 = scmp.ge.s32.totalorder %s13_s16, 6   ;;  %s4585_s13 = smov %s3577_s15 }
 0x1a5   : > { %s4586_s14 = smov %s4589_s17  ;;  %s4587_s15 = smov %s4593_s18 }
 0x1a6   :  { %12 = sbr.rel (!%p10_p7) target bundleno = 3 (0x3), region = 73 }

</bundles_post_ra>
